<compile_context>
chip_gen: v6e
topology: v6e:2x2x1
jax: 0.10.0
libtpu: 0.0.40
codegen_flags: <defaults>
</compile_context>

<pallas_src>
import functools

import jax
import jax.numpy as jnp
from jax.experimental import pallas as pl
from jax.experimental.pallas import tpu as pltpu


_NEG_SLOPE = 0.01
_HIDDEN = (128, 512, 128, 32)
_OUT_PAD = 128           # final layer padded to 128 lanes inside VMEM only
_BIAS_PACK_W = 512       # widest bias (layer 1)
_OLD_GEN_TAGS = ("v2", "v3", "v4", "v5")   # no bf16 VALU, 16 MiB scoped VMEM


def _leaky_relu(x):
    return jnp.where(x >= 0, x, _NEG_SLOPE * x)


def _round_up(n, m):
    return ((n + m - 1) // m) * m


def _device_kind():
    try:
        return jax.devices()[0].device_kind.lower()
    except Exception:
        return ""


def _is_old_gen():
    kind = _device_kind()
    return any(tag in kind for tag in _OLD_GEN_TAGS)


def _select_act_dtype(use_bf16):
    # v6e/v7x have bf16 VALUs -> do the dominant (tb x 512) leaky_relu in bf16.
    # v5e and older have no bf16 VALU path -> keep activation math in f32.
    if use_bf16 and not _is_old_gen():
        return jnp.bfloat16
    return jnp.float32


def _default_tile_b():
    # v5e: cap at 2048 to stay under the 16 MiB scoped-VMEM default.
    # v6e/v7x: 4096 amortizes the ~0.35 us/grid-step overhead, fits 32 MiB.
    return 2048 if _is_old_gen() else 4096


def _actor_kernel(x_ref,
                  w0_ref, w1_ref, w2_ref, w3_ref, w4_ref,
                  b_ref,
                  o_ref,
                  *, max_action, act_dtype, action_dim):
    """One batch tile of the fused 5-layer MLP. Weights stay VMEM-resident."""
    b = b_ref[...]            # (5, 512) f32; row r = bias of layer r (zero padded)
    x = x_ref[...]            # (TILE_B, state_dim), compute dtype (bf16 or f32)

    h = jnp.dot(x, w0_ref[...], preferred_element_type=jnp.float32)
    h = _leaky_relu((h + b[0, :128]).astype(act_dtype))

    h = jnp.dot(h.astype(w1_ref.dtype), w1_ref[...],
                preferred_element_type=jnp.float32)
    h = _leaky_relu((h + b[1, :512]).astype(act_dtype))

    h = jnp.dot(h.astype(w2_ref.dtype), w2_ref[...],
                preferred_element_type=jnp.float32)
    h = _leaky_relu((h + b[2, :128]).astype(act_dtype))

    h = jnp.dot(h.astype(w3_ref.dtype), w3_ref[...],
                preferred_element_type=jnp.float32)
    h = _leaky_relu((h + b[3, :32]).astype(act_dtype))

    y = jnp.dot(h.astype(w4_ref.dtype), w4_ref[...],
                preferred_element_type=jnp.float32)
    y = y + b[4, :_OUT_PAD]                  # padded cols are zero -> tanh(0)=0
    y = max_action * jnp.tanh(y)             # padded tanh sits in the EUP slot
    # Only the real action_dim columns are written back to HBM (unpadded store).
    o_ref[...] = y[:, :action_dim].astype(o_ref.dtype)


def actor_forward(x, params, max_action, *, tile_b=None, use_bf16=True):
    """x: (batch, state_dim) f32. params: list of (W, b), W stored as (in, out)."""
    batch, state_dim = x.shape
    action_dim = params[-1][0].shape[1]
    compute_dtype = jnp.bfloat16 if use_bf16 else jnp.float32
    act_dtype = _select_act_dtype(use_bf16)
    if tile_b is None:
        tile_b = _default_tile_b()

    # --- Pad the last layer to 128 output lanes (MXU-friendly; VMEM only). ---
    w4, b4 = params[-1]
    w4p = jnp.zeros((w4.shape[0], _OUT_PAD), jnp.float32).at[:, :action_dim].set(w4)
    b4p = jnp.zeros((_OUT_PAD,), jnp.float32).at[:action_dim].set(b4)

    weights = [params[0][0], params[1][0], params[2][0], params[3][0], w4p]
    biases = [params[0][1], params[1][1], params[2][1], params[3][1], b4p]

    # --- Pack the 5 biases into one (5, 512) f32 array (single descriptor). --
    b_pack = jnp.zeros((len(biases), _BIAS_PACK_W), jnp.float32)
    for i, bb in enumerate(biases):
        b_pack = b_pack.at[i, : bb.shape[0]].set(bb.astype(jnp.float32))

    # --- Cast weights to the compute dtype (bf16 by default: MXU-native). ----
    weights = [w.astype(compute_dtype) for w in weights]

    # --- Batch tiling; force >= 2 grid steps so both v7x TCs get work. -------
    batch8 = _round_up(batch, 8)
    half = _round_up(-(-batch8 // 2), 8)
    tb = max(8, min(int(tile_b), half))
    padded_b = _round_up(batch, tb)
    if padded_b // tb < 2:
        padded_b = 2 * tb
    grid = (padded_b // tb,)

    xp = x
    if padded_b != batch:
        xp = jnp.zeros((padded_b, state_dim), x.dtype).at[:batch].set(x)
    xp = xp.astype(compute_dtype)

    # --- Advisory cost estimate (reflects the unpadded f32 writeback). -------
    dims = [state_dim] + list(_HIDDEN) + [_OUT_PAD]
    flops = 2 * padded_b * sum(dims[i] * dims[i + 1] for i in range(len(dims) - 1))
    itemsize = jnp.dtype(compute_dtype).itemsize
    bytes_accessed = (
        padded_b * state_dim * itemsize
        + sum(int(w.size) * itemsize for w in weights)
        + int(b_pack.size) * 4
        + padded_b * action_dim * 4
    )
    cost = pl.CostEstimate(
        flops=int(flops),
        transcendentals=int(padded_b * _OUT_PAD),
        bytes_accessed=int(bytes_accessed),
    )

    kernel = functools.partial(
        _actor_kernel,
        max_action=float(max_action),
        act_dtype=act_dtype,
        action_dim=int(action_dim),
    )
    out_shape = jax.ShapeDtypeStruct((padded_b, action_dim), jnp.float32)

    def _call(single_buffer_resident):
        # Resident operands (5 weights + bias pack): constant index_map and,
        # when supported, a single pipeline buffer (no wasted 2x double-buffer).
        resident = ({"pipeline_mode": pl.Buffered(1)}
                    if single_buffer_resident else {})
        x_spec = pl.BlockSpec((tb, state_dim), lambda i: (i, 0))
        w_specs = [pl.BlockSpec(w.shape, lambda i: (0, 0), **resident)
                   for w in weights]
        b_spec = pl.BlockSpec(b_pack.shape, lambda i: (0, 0), **resident)
        out_spec = pl.BlockSpec((tb, action_dim), lambda i: (i, 0))
        return pl.pallas_call(
            kernel,
            out_shape=out_shape,
            grid=grid,
            in_specs=[x_spec] + w_specs + [b_spec],
            out_specs=out_spec,
            compiler_params=pltpu.CompilerParams(
                dimension_semantics=("parallel",)),
            cost_estimate=cost,
        )(xp, *weights, b_pack)

    try:
        out_full = _call(True)
    except Exception:
        # Fallback if this Pallas build rejects Buffered(1) on resident inputs.
        out_full = _call(False)

    return out_full[:batch]


def init_actor_params(key, state_dim, action_dim):
    """Xavier-normal weights (as in the module) + PyTorch-style uniform biases."""
    dims = [state_dim] + list(_HIDDEN) + [action_dim]
    params = []
    for i in range(len(dims) - 1):
        fan_in, fan_out = dims[i], dims[i + 1]
        key, wk, bk = jax.random.split(key, 3)
        std = (2.0 / (fan_in + fan_out)) ** 0.5
        # Stored transposed relative to PyTorch: (in, out) so kernel does x @ W.
        w = std * jax.random.normal(wk, (fan_in, fan_out), dtype=jnp.float32)
        bound = 1.0 / (fan_in ** 0.5)
        b = jax.random.uniform(bk, (fan_out,), minval=-bound, maxval=bound,
                               dtype=jnp.float32)
        params.append((w, b))
    return params


def actor_reference(x, params, max_action,
                    compute_dtype=jnp.float32, act_dtype=jnp.float32):
    """Pure-JAX reference mirroring the kernel's mixed precision."""
    h = x.astype(compute_dtype)
    for w, b in params[:-1]:
        acc = jnp.dot(h, w.astype(compute_dtype),
                      preferred_element_type=jnp.float32) + b
        h = _leaky_relu(acc.astype(act_dtype)).astype(compute_dtype)
    w, b = params[-1]
    y = jnp.dot(h, w.astype(compute_dtype),
                preferred_element_type=jnp.float32) + b
    return max_action * jnp.tanh(y)


if __name__ == "__main__":
    state_dim = 16
    action_dim = 4
    max_action = 2.0
    batch = 2

    key = jax.random.PRNGKey(0)
    key, xk = jax.random.split(key)
    x = jax.random.normal(xk, (batch, state_dim), dtype=jnp.float32)

    params = init_actor_params(key, state_dim, action_dim)

    out = actor_forward(x, params, max_action)
    out = jax.block_until_ready(out)
    assert out.shape == (batch, action_dim)

    # Tight check vs a reference that mirrors the kernel's mixed precision
    # (bf16 MXU operands / f32 accumulate, generation-matched activation dtype),
    # looser check vs the pure-f32 reference.
    act_dtype = _select_act_dtype(True)
    ref_match = actor_reference(x, params, max_action,
                                compute_dtype=jnp.bfloat16, act_dtype=act_dtype)
    ref_f32 = actor_reference(x, params, max_action,
                              compute_dtype=jnp.float32, act_dtype=jnp.float32)
    assert jnp.allclose(out, ref_match, atol=5e-3, rtol=5e-3), \
        "mismatch vs mixed-precision reference"
    assert jnp.allclose(out, ref_f32, atol=5e-2, rtol=5e-2), \
        "mismatch vs f32 reference"

    print("KERNEL_OK")
</pallas_src>

<mosaic_0001>
module attributes {stable_mosaic.version = 11 : i64} {
  func.func @_actor_kernel(%arg0: i32, %arg1: memref<8x16xbf16, #tpu.memory_space<vmem>>, %arg2: memref<16x128xbf16, #tpu.memory_space<vmem>>, %arg3: memref<128x512xbf16, #tpu.memory_space<vmem>>, %arg4: memref<512x128xbf16, #tpu.memory_space<vmem>>, %arg5: memref<128x32xbf16, #tpu.memory_space<vmem>>, %arg6: memref<32x128xbf16, #tpu.memory_space<vmem>>, %arg7: memref<5x512xf32, #tpu.memory_space<vmem>>, %arg8: memref<8x4xf32, #tpu.memory_space<vmem>>) attributes {dimension_semantics = [#tpu.dimension_semantics<parallel>], iteration_bounds = array<i64: 2>, scalar_prefetch = 0 : i64, scratch_operands = 0 : i64, tpu.core_type = #tpu.core_type<tc>, window_params = [{transform_indices = @transform_0, window_bounds = array<i64: 8, 16>}, {pipeline_mode = #tpu.pipeline_mode<synchronous>, transform_indices = @transform_1, window_bounds = array<i64: 16, 128>}, {pipeline_mode = #tpu.pipeline_mode<synchronous>, transform_indices = @transform_2, window_bounds = array<i64: 128, 512>}, {pipeline_mode = #tpu.pipeline_mode<synchronous>, transform_indices = @transform_3, window_bounds = array<i64: 512, 128>}, {pipeline_mode = #tpu.pipeline_mode<synchronous>, transform_indices = @transform_4, window_bounds = array<i64: 128, 32>}, {pipeline_mode = #tpu.pipeline_mode<synchronous>, transform_indices = @transform_5, window_bounds = array<i64: 32, 128>}, {pipeline_mode = #tpu.pipeline_mode<synchronous>, transform_indices = @transform_6, window_bounds = array<i64: 5, 512>}, {transform_indices = @transform_7, window_bounds = array<i64: 8, 4>}]} {
    %c0 = arith.constant 0 : index
    %c0_0 = arith.constant 0 : index
    %0 = vector.load %arg7[%c0, %c0_0] : memref<5x512xf32, #tpu.memory_space<vmem>>, vector<5x512xf32>
    %c0_1 = arith.constant 0 : index
    %c0_2 = arith.constant 0 : index
    %1 = vector.load %arg1[%c0_1, %c0_2] : memref<8x16xbf16, #tpu.memory_space<vmem>>, vector<8x16xbf16>
    %c0_3 = arith.constant 0 : index
    %c0_4 = arith.constant 0 : index
    %2 = vector.load %arg2[%c0_3, %c0_4] : memref<16x128xbf16, #tpu.memory_space<vmem>>, vector<16x128xbf16>
    %cst = arith.constant dense<0.000000e+00> : vector<8x128xf32>
    %3 = tpu.matmul %1, %2, %cst {dimension_numbers = #tpu.dot_dimension_numbers<[1], [0], [0], [1], [0, 0, 1, 1], [], []>} : vector<8x16xbf16>, vector<16x128xbf16>, vector<8x128xf32> -> vector<8x128xf32>
    %4 = vector.extract_strided_slice %0 {offsets = [0, 0], sizes = [1, 128], strides = [1, 1]} : vector<5x512xf32> to vector<1x128xf32>
    %5 = vector.shape_cast %4 : vector<1x128xf32> to vector<128xf32>
    %6 = vector.shape_cast %5 : vector<128xf32> to vector<1x128xf32>
    %7 = vector.broadcast %6 : vector<1x128xf32> to vector<8x128xf32>
    %8 = arith.addf %3, %7 : vector<8x128xf32>
    %9 = arith.truncf %8 : vector<8x128xf32> to vector<8x128xbf16>
    %cst_5 = arith.constant 0.000000e+00 : bf16
    %10 = vector.broadcast %cst_5 : bf16 to vector<8x128xbf16>
    %11 = arith.cmpf oge, %9, %10 : vector<8x128xbf16>
    %cst_6 = arith.constant 1.000980e-02 : bf16
    %12 = vector.broadcast %cst_6 : bf16 to vector<8x128xbf16>
    %13 = arith.mulf %12, %9 : vector<8x128xbf16>
    %14 = arith.select %11, %9, %13 : vector<8x128xi1>, vector<8x128xbf16>
    %c0_7 = arith.constant 0 : index
    %c0_8 = arith.constant 0 : index
    %15 = vector.load %arg3[%c0_7, %c0_8] : memref<128x512xbf16, #tpu.memory_space<vmem>>, vector<128x512xbf16>
    %cst_9 = arith.constant dense<0.000000e+00> : vector<8x512xf32>
    %16 = tpu.matmul %14, %15, %cst_9 {dimension_numbers = #tpu.dot_dimension_numbers<[1], [0], [0], [1], [0, 0, 1, 1], [], []>} : vector<8x128xbf16>, vector<128x512xbf16>, vector<8x512xf32> -> vector<8x512xf32>
    %17 = vector.extract_strided_slice %0 {offsets = [1, 0], sizes = [1, 512], strides = [1, 1]} : vector<5x512xf32> to vector<1x512xf32>
    %18 = vector.shape_cast %17 : vector<1x512xf32> to vector<512xf32>
    %19 = vector.shape_cast %18 : vector<512xf32> to vector<1x512xf32>
    %20 = vector.broadcast %19 : vector<1x512xf32> to vector<8x512xf32>
    %21 = arith.addf %16, %20 : vector<8x512xf32>
    %22 = arith.truncf %21 : vector<8x512xf32> to vector<8x512xbf16>
    %cst_10 = arith.constant 0.000000e+00 : bf16
    %23 = vector.broadcast %cst_10 : bf16 to vector<8x512xbf16>
    %24 = arith.cmpf oge, %22, %23 : vector<8x512xbf16>
    %cst_11 = arith.constant 1.000980e-02 : bf16
    %25 = vector.broadcast %cst_11 : bf16 to vector<8x512xbf16>
    %26 = arith.mulf %25, %22 : vector<8x512xbf16>
    %27 = arith.select %24, %22, %26 : vector<8x512xi1>, vector<8x512xbf16>
    %c0_12 = arith.constant 0 : index
    %c0_13 = arith.constant 0 : index
    %28 = vector.load %arg4[%c0_12, %c0_13] : memref<512x128xbf16, #tpu.memory_space<vmem>>, vector<512x128xbf16>
    %cst_14 = arith.constant dense<0.000000e+00> : vector<8x128xf32>
    %29 = tpu.matmul %27, %28, %cst_14 {dimension_numbers = #tpu.dot_dimension_numbers<[1], [0], [0], [1], [0, 0, 1, 1], [], []>} : vector<8x512xbf16>, vector<512x128xbf16>, vector<8x128xf32> -> vector<8x128xf32>
    %30 = vector.extract_strided_slice %0 {offsets = [2, 0], sizes = [1, 128], strides = [1, 1]} : vector<5x512xf32> to vector<1x128xf32>
    %31 = vector.shape_cast %30 : vector<1x128xf32> to vector<128xf32>
    %32 = vector.shape_cast %31 : vector<128xf32> to vector<1x128xf32>
    %33 = vector.broadcast %32 : vector<1x128xf32> to vector<8x128xf32>
    %34 = arith.addf %29, %33 : vector<8x128xf32>
    %35 = arith.truncf %34 : vector<8x128xf32> to vector<8x128xbf16>
    %cst_15 = arith.constant 0.000000e+00 : bf16
    %36 = vector.broadcast %cst_15 : bf16 to vector<8x128xbf16>
    %37 = arith.cmpf oge, %35, %36 : vector<8x128xbf16>
    %cst_16 = arith.constant 1.000980e-02 : bf16
    %38 = vector.broadcast %cst_16 : bf16 to vector<8x128xbf16>
    %39 = arith.mulf %38, %35 : vector<8x128xbf16>
    %40 = arith.select %37, %35, %39 : vector<8x128xi1>, vector<8x128xbf16>
    %c0_17 = arith.constant 0 : index
    %c0_18 = arith.constant 0 : index
    %41 = vector.load %arg5[%c0_17, %c0_18] : memref<128x32xbf16, #tpu.memory_space<vmem>>, vector<128x32xbf16>
    %cst_19 = arith.constant dense<0.000000e+00> : vector<8x32xf32>
    %42 = tpu.matmul %40, %41, %cst_19 {dimension_numbers = #tpu.dot_dimension_numbers<[1], [0], [0], [1], [0, 0, 1, 1], [], []>} : vector<8x128xbf16>, vector<128x32xbf16>, vector<8x32xf32> -> vector<8x32xf32>
    %43 = vector.extract_strided_slice %0 {offsets = [3, 0], sizes = [1, 32], strides = [1, 1]} : vector<5x512xf32> to vector<1x32xf32>
    %44 = vector.shape_cast %43 : vector<1x32xf32> to vector<32xf32>
    %45 = vector.shape_cast %44 : vector<32xf32> to vector<1x32xf32>
    %46 = vector.broadcast %45 : vector<1x32xf32> to vector<8x32xf32>
    %47 = arith.addf %42, %46 : vector<8x32xf32>
    %48 = arith.truncf %47 : vector<8x32xf32> to vector<8x32xbf16>
    %cst_20 = arith.constant 0.000000e+00 : bf16
    %49 = vector.broadcast %cst_20 : bf16 to vector<8x32xbf16>
    %50 = arith.cmpf oge, %48, %49 : vector<8x32xbf16>
    %cst_21 = arith.constant 1.000980e-02 : bf16
    %51 = vector.broadcast %cst_21 : bf16 to vector<8x32xbf16>
    %52 = arith.mulf %51, %48 : vector<8x32xbf16>
    %53 = arith.select %50, %48, %52 : vector<8x32xi1>, vector<8x32xbf16>
    %c0_22 = arith.constant 0 : index
    %c0_23 = arith.constant 0 : index
    %54 = vector.load %arg6[%c0_22, %c0_23] : memref<32x128xbf16, #tpu.memory_space<vmem>>, vector<32x128xbf16>
    %cst_24 = arith.constant dense<0.000000e+00> : vector<8x128xf32>
    %55 = tpu.matmul %53, %54, %cst_24 {dimension_numbers = #tpu.dot_dimension_numbers<[1], [0], [0], [1], [0, 0, 1, 1], [], []>} : vector<8x32xbf16>, vector<32x128xbf16>, vector<8x128xf32> -> vector<8x128xf32>
    %56 = vector.extract_strided_slice %0 {offsets = [4, 0], sizes = [1, 128], strides = [1, 1]} : vector<5x512xf32> to vector<1x128xf32>
    %57 = vector.shape_cast %56 : vector<1x128xf32> to vector<128xf32>
    %58 = vector.shape_cast %57 : vector<128xf32> to vector<1x128xf32>
    %59 = vector.broadcast %58 : vector<1x128xf32> to vector<8x128xf32>
    %60 = arith.addf %55, %59 : vector<8x128xf32>
    %61 = math.tanh %60 : vector<8x128xf32>
    %cst_25 = arith.constant 2.000000e+00 : f32
    %62 = vector.broadcast %cst_25 : f32 to vector<8x128xf32>
    %63 = arith.mulf %62, %61 : vector<8x128xf32>
    %64 = vector.extract_strided_slice %63 {offsets = [0, 0], sizes = [8, 4], strides = [1, 1]} : vector<8x128xf32> to vector<8x4xf32>
    %c0_26 = arith.constant 0 : index
    %c0_27 = arith.constant 0 : index
    %65 = vector.load %arg8[%c0_26, %c0_27] : memref<8x4xf32, #tpu.memory_space<vmem>>, vector<8x4xf32>
    tpu.vector_store %arg8[%c0_26, %c0_27], %64 {strides = array<i32>} : memref<8x4xf32, #tpu.memory_space<vmem>>, vector<8x4xf32>,
    return
  }
  func.func @transform_0(%arg0: i32) -> (i32, i32) {
    %c0_i32 = arith.constant 0 : i32
    %c0_i32_0 = arith.constant 0 : i32
    return %arg0, %c0_i32 : i32, i32
  }
  func.func @transform_1(%arg0: i32) -> (i32, i32) {
    %c0_i32 = arith.constant 0 : i32
    %c0_i32_0 = arith.constant 0 : i32
    %c0_i32_1 = arith.constant 0 : i32
    return %c0_i32, %c0_i32_0 : i32, i32
  }
  func.func @transform_2(%arg0: i32) -> (i32, i32) {
    %c0_i32 = arith.constant 0 : i32
    %c0_i32_0 = arith.constant 0 : i32
    %c0_i32_1 = arith.constant 0 : i32
    return %c0_i32, %c0_i32_0 : i32, i32
  }
  func.func @transform_3(%arg0: i32) -> (i32, i32) {
    %c0_i32 = arith.constant 0 : i32
    %c0_i32_0 = arith.constant 0 : i32
    %c0_i32_1 = arith.constant 0 : i32
    return %c0_i32, %c0_i32_0 : i32, i32
  }
  func.func @transform_4(%arg0: i32) -> (i32, i32) {
    %c0_i32 = arith.constant 0 : i32
    %c0_i32_0 = arith.constant 0 : i32
    %c0_i32_1 = arith.constant 0 : i32
    return %c0_i32, %c0_i32_0 : i32, i32
  }
  func.func @transform_5(%arg0: i32) -> (i32, i32) {
    %c0_i32 = arith.constant 0 : i32
    %c0_i32_0 = arith.constant 0 : i32
    %c0_i32_1 = arith.constant 0 : i32
    return %c0_i32, %c0_i32_0 : i32, i32
  }
  func.func @transform_6(%arg0: i32) -> (i32, i32) {
    %c0_i32 = arith.constant 0 : i32
    %c0_i32_0 = arith.constant 0 : i32
    %c0_i32_1 = arith.constant 0 : i32
    return %c0_i32, %c0_i32_0 : i32, i32
  }
  func.func @transform_7(%arg0: i32) -> (i32, i32) {
    %c0_i32 = arith.constant 0 : i32
    %c0_i32_0 = arith.constant 0 : i32
    return %arg0, %c0_i32 : i32, i32
  }
}

module attributes {stable_mosaic.version = 11 : i64} {
  func.func @_actor_kernel(%arg0: i32, %arg1: memref<8x16xbf16, #tpu.memory_space<vmem>>, %arg2: memref<16x128xbf16, #tpu.memory_space<vmem>>, %arg3: memref<128x512xbf16, #tpu.memory_space<vmem>>, %arg4: memref<512x128xbf16, #tpu.memory_space<vmem>>, %arg5: memref<128x32xbf16, #tpu.memory_space<vmem>>, %arg6: memref<32x128xbf16, #tpu.memory_space<vmem>>, %arg7: memref<5x512xf32, #tpu.memory_space<vmem>>, %arg8: memref<8x4xf32, #tpu.memory_space<vmem>>) attributes {dimension_semantics = [#tpu.dimension_semantics<parallel>], iteration_bounds = array<i64: 2>, scalar_prefetch = 0 : i64, scratch_operands = 0 : i64, tpu.core_type = #tpu.core_type<tc>, window_params = [{transform_indices = @transform_0, window_bounds = array<i64: 8, 16>}, {pipeline_mode = #tpu.pipeline_mode<synchronous>, transform_indices = @transform_1, window_bounds = array<i64: 16, 128>}, {pipeline_mode = #tpu.pipeline_mode<synchronous>, transform_indices = @transform_2, window_bounds = array<i64: 128, 512>}, {pipeline_mode = #tpu.pipeline_mode<synchronous>, transform_indices = @transform_3, window_bounds = array<i64: 512, 128>}, {pipeline_mode = #tpu.pipeline_mode<synchronous>, transform_indices = @transform_4, window_bounds = array<i64: 128, 32>}, {pipeline_mode = #tpu.pipeline_mode<synchronous>, transform_indices = @transform_5, window_bounds = array<i64: 32, 128>}, {pipeline_mode = #tpu.pipeline_mode<synchronous>, transform_indices = @transform_6, window_bounds = array<i64: 5, 512>}, {transform_indices = @transform_7, window_bounds = array<i64: 8, 4>}]} {
    %c0 = arith.constant 0 : index
    %c0_0 = arith.constant 0 : index
    %0 = vector.load %arg7[%c0, %c0_0] : memref<5x512xf32, #tpu.memory_space<vmem>>, vector<5x512xf32>
    %c0_1 = arith.constant 0 : index
    %c0_2 = arith.constant 0 : index
    %1 = vector.load %arg1[%c0_1, %c0_2] : memref<8x16xbf16, #tpu.memory_space<vmem>>, vector<8x16xbf16>
    %c0_3 = arith.constant 0 : index
    %c0_4 = arith.constant 0 : index
    %2 = vector.load %arg2[%c0_3, %c0_4] : memref<16x128xbf16, #tpu.memory_space<vmem>>, vector<16x128xbf16>
    %cst = arith.constant dense<0.000000e+00> : vector<8x128xf32>
    %3 = tpu.matmul %1, %2, %cst {dimension_numbers = #tpu.dot_dimension_numbers<[1], [0], [0], [1], [0, 0, 1, 1], [], []>} : vector<8x16xbf16>, vector<16x128xbf16>, vector<8x128xf32> -> vector<8x128xf32>
    %4 = vector.extract_strided_slice %0 {offsets = [0, 0], sizes = [1, 128], strides = [1, 1]} : vector<5x512xf32> to vector<1x128xf32>
    %5 = vector.shape_cast %4 : vector<1x128xf32> to vector<128xf32>
    %6 = vector.shape_cast %5 : vector<128xf32> to vector<1x128xf32>
    %7 = vector.broadcast %6 : vector<1x128xf32> to vector<8x128xf32>
    %8 = arith.addf %3, %7 : vector<8x128xf32>
    %9 = arith.truncf %8 : vector<8x128xf32> to vector<8x128xbf16>
    %cst_5 = arith.constant 0.000000e+00 : bf16
    %10 = vector.broadcast %cst_5 : bf16 to vector<8x128xbf16>
    %11 = arith.cmpf oge, %9, %10 : vector<8x128xbf16>
    %cst_6 = arith.constant 1.000980e-02 : bf16
    %12 = vector.broadcast %cst_6 : bf16 to vector<8x128xbf16>
    %13 = arith.mulf %12, %9 : vector<8x128xbf16>
    %14 = arith.select %11, %9, %13 : vector<8x128xi1>, vector<8x128xbf16>
    %c0_7 = arith.constant 0 : index
    %c0_8 = arith.constant 0 : index
    %15 = vector.load %arg3[%c0_7, %c0_8] : memref<128x512xbf16, #tpu.memory_space<vmem>>, vector<128x512xbf16>
    %cst_9 = arith.constant dense<0.000000e+00> : vector<8x512xf32>
    %16 = tpu.matmul %14, %15, %cst_9 {dimension_numbers = #tpu.dot_dimension_numbers<[1], [0], [0], [1], [0, 0, 1, 1], [], []>} : vector<8x128xbf16>, vector<128x512xbf16>, vector<8x512xf32> -> vector<8x512xf32>
    %17 = vector.extract_strided_slice %0 {offsets = [1, 0], sizes = [1, 512], strides = [1, 1]} : vector<5x512xf32> to vector<1x512xf32>
    %18 = vector.shape_cast %17 : vector<1x512xf32> to vector<512xf32>
    %19 = vector.shape_cast %18 : vector<512xf32> to vector<1x512xf32>
    %20 = vector.broadcast %19 : vector<1x512xf32> to vector<8x512xf32>
    %21 = arith.addf %16, %20 : vector<8x512xf32>
    %22 = arith.truncf %21 : vector<8x512xf32> to vector<8x512xbf16>
    %cst_10 = arith.constant 0.000000e+00 : bf16
    %23 = vector.broadcast %cst_10 : bf16 to vector<8x512xbf16>
    %24 = arith.cmpf oge, %22, %23 : vector<8x512xbf16>
    %cst_11 = arith.constant 1.000980e-02 : bf16
    %25 = vector.broadcast %cst_11 : bf16 to vector<8x512xbf16>
    %26 = arith.mulf %25, %22 : vector<8x512xbf16>
    %27 = arith.select %24, %22, %26 : vector<8x512xi1>, vector<8x512xbf16>
    %c0_12 = arith.constant 0 : index
    %c0_13 = arith.constant 0 : index
    %28 = vector.load %arg4[%c0_12, %c0_13] : memref<512x128xbf16, #tpu.memory_space<vmem>>, vector<512x128xbf16>
    %cst_14 = arith.constant dense<0.000000e+00> : vector<8x128xf32>
    %29 = tpu.matmul %27, %28, %cst_14 {dimension_numbers = #tpu.dot_dimension_numbers<[1], [0], [0], [1], [0, 0, 1, 1], [], []>} : vector<8x512xbf16>, vector<512x128xbf16>, vector<8x128xf32> -> vector<8x128xf32>
    %30 = vector.extract_strided_slice %0 {offsets = [2, 0], sizes = [1, 128], strides = [1, 1]} : vector<5x512xf32> to vector<1x128xf32>
    %31 = vector.shape_cast %30 : vector<1x128xf32> to vector<128xf32>
    %32 = vector.shape_cast %31 : vector<128xf32> to vector<1x128xf32>
    %33 = vector.broadcast %32 : vector<1x128xf32> to vector<8x128xf32>
    %34 = arith.addf %29, %33 : vector<8x128xf32>
    %35 = arith.truncf %34 : vector<8x128xf32> to vector<8x128xbf16>
    %cst_15 = arith.constant 0.000000e+00 : bf16
    %36 = vector.broadcast %cst_15 : bf16 to vector<8x128xbf16>
    %37 = arith.cmpf oge, %35, %36 : vector<8x128xbf16>
    %cst_16 = arith.constant 1.000980e-02 : bf16
    %38 = vector.broadcast %cst_16 : bf16 to vector<8x128xbf16>
    %39 = arith.mulf %38, %35 : vector<8x128xbf16>
    %40 = arith.select %37, %35, %39 : vector<8x128xi1>, vector<8x128xbf16>
    %c0_17 = arith.constant 0 : index
    %c0_18 = arith.constant 0 : index
    %41 = vector.load %arg5[%c0_17, %c0_18] : memref<128x32xbf16, #tpu.memory_space<vmem>>, vector<128x32xbf16>
    %cst_19 = arith.constant dense<0.000000e+00> : vector<8x32xf32>
    %42 = tpu.matmul %40, %41, %cst_19 {dimension_numbers = #tpu.dot_dimension_numbers<[1], [0], [0], [1], [0, 0, 1, 1], [], []>} : vector<8x128xbf16>, vector<128x32xbf16>, vector<8x32xf32> -> vector<8x32xf32>
    %43 = vector.extract_strided_slice %0 {offsets = [3, 0], sizes = [1, 32], strides = [1, 1]} : vector<5x512xf32> to vector<1x32xf32>
    %44 = vector.shape_cast %43 : vector<1x32xf32> to vector<32xf32>
    %45 = vector.shape_cast %44 : vector<32xf32> to vector<1x32xf32>
    %46 = vector.broadcast %45 : vector<1x32xf32> to vector<8x32xf32>
    %47 = arith.addf %42, %46 : vector<8x32xf32>
    %48 = arith.truncf %47 : vector<8x32xf32> to vector<8x32xbf16>
    %cst_20 = arith.constant 0.000000e+00 : bf16
    %49 = vector.broadcast %cst_20 : bf16 to vector<8x32xbf16>
    %50 = arith.cmpf oge, %48, %49 : vector<8x32xbf16>
    %cst_21 = arith.constant 1.000980e-02 : bf16
    %51 = vector.broadcast %cst_21 : bf16 to vector<8x32xbf16>
    %52 = arith.mulf %51, %48 : vector<8x32xbf16>
    %53 = arith.select %50, %48, %52 : vector<8x32xi1>, vector<8x32xbf16>
    %c0_22 = arith.constant 0 : index
    %c0_23 = arith.constant 0 : index
    %54 = vector.load %arg6[%c0_22, %c0_23] : memref<32x128xbf16, #tpu.memory_space<vmem>>, vector<32x128xbf16>
    %cst_24 = arith.constant dense<0.000000e+00> : vector<8x128xf32>
    %55 = tpu.matmul %53, %54, %cst_24 {dimension_numbers = #tpu.dot_dimension_numbers<[1], [0], [0], [1], [0, 0, 1, 1], [], []>} : vector<8x32xbf16>, vector<32x128xbf16>, vector<8x128xf32> -> vector<8x128xf32>
    %56 = vector.extract_strided_slice %0 {offsets = [4, 0], sizes = [1, 128], strides = [1, 1]} : vector<5x512xf32> to vector<1x128xf32>
    %57 = vector.shape_cast %56 : vector<1x128xf32> to vector<128xf32>
    %58 = vector.shape_cast %57 : vector<128xf32> to vector<1x128xf32>
    %59 = vector.broadcast %58 : vector<1x128xf32> to vector<8x128xf32>
    %60 = arith.addf %55, %59 : vector<8x128xf32>
    %61 = math.tanh %60 : vector<8x128xf32>
    %cst_25 = arith.constant 2.000000e+00 : f32
    %62 = vector.broadcast %cst_25 : f32 to vector<8x128xf32>
    %63 = arith.mulf %62, %61 : vector<8x128xf32>
    %64 = vector.extract_strided_slice %63 {offsets = [0, 0], sizes = [8, 4], strides = [1, 1]} : vector<8x128xf32> to vector<8x4xf32>
    %c0_26 = arith.constant 0 : index
    %c0_27 = arith.constant 0 : index
    %65 = vector.load %arg8[%c0_26, %c0_27] : memref<8x4xf32, #tpu.memory_space<vmem>>, vector<8x4xf32>
    tpu.vector_store %arg8[%c0_26, %c0_27], %64 {strides = array<i32>} : memref<8x4xf32, #tpu.memory_space<vmem>>, vector<8x4xf32>,
    return
  }
  func.func @transform_0(%arg0: i32) -> (i32, i32) {
    %c0_i32 = arith.constant 0 : i32
    %c0_i32_0 = arith.constant 0 : i32
    return %arg0, %c0_i32 : i32, i32
  }
  func.func @transform_1(%arg0: i32) -> (i32, i32) {
    %c0_i32 = arith.constant 0 : i32
    %c0_i32_0 = arith.constant 0 : i32
    %c0_i32_1 = arith.constant 0 : i32
    return %c0_i32, %c0_i32_0 : i32, i32
  }
  func.func @transform_2(%arg0: i32) -> (i32, i32) {
    %c0_i32 = arith.constant 0 : i32
    %c0_i32_0 = arith.constant 0 : i32
    %c0_i32_1 = arith.constant 0 : i32
    return %c0_i32, %c0_i32_0 : i32, i32
  }
  func.func @transform_3(%arg0: i32) -> (i32, i32) {
    %c0_i32 = arith.constant 0 : i32
    %c0_i32_0 = arith.constant 0 : i32
    %c0_i32_1 = arith.constant 0 : i32
    return %c0_i32, %c0_i32_0 : i32, i32
  }
  func.func @transform_4(%arg0: i32) -> (i32, i32) {
    %c0_i32 = arith.constant 0 : i32
    %c0_i32_0 = arith.constant 0 : i32
    %c0_i32_1 = arith.constant 0 : i32
    return %c0_i32, %c0_i32_0 : i32, i32
  }
  func.func @transform_5(%arg0: i32) -> (i32, i32) {
    %c0_i32 = arith.constant 0 : i32
    %c0_i32_0 = arith.constant 0 : i32
    %c0_i32_1 = arith.constant 0 : i32
    return %c0_i32, %c0_i32_0 : i32, i32
  }
  func.func @transform_6(%arg0: i32) -> (i32, i32) {
    %c0_i32 = arith.constant 0 : i32
    %c0_i32_0 = arith.constant 0 : i32
    %c0_i32_1 = arith.constant 0 : i32
    return %c0_i32, %c0_i32_0 : i32, i32
  }
  func.func @transform_7(%arg0: i32) -> (i32, i32) {
    %c0_i32 = arith.constant 0 : i32
    %c0_i32_0 = arith.constant 0 : i32
    return %arg0, %c0_i32 : i32, i32
  }
}

</mosaic_0001>

<bundles_post_ra>
// kernel: tpu_custom_call.1
= control target key start
LH: loop header
LB: loop body
LE: loop exit
PB: predicated region body
PF: predicated region fallthrough
CT: control target
= control target key end

     0   :  { %12 = vsyncpa [#allocation3], 0  ;;  %s1846_s0 = inlined_call_operand.vmem [shape: bf16[16,16], index: 0, kind: input, shape index: {}]   ;;  %s1847_s1 = inlined_call_operand.vmem [shape: bf16[16,128], index: 1, kind: input, shape index: {}]   ;;  %s1848_s2 = inlined_call_operand.hbm [shape: bf16[128,512], index: 2, kind: input, shape index: {}]   ;;  %s1849_s3 = inlined_call_operand.hbm [shape: bf16[512,128], index: 3, kind: input, shape index: {}]   ;;  %s1850_s4 = inlined_call_operand.vmem [shape: bf16[128,32], index: 4, kind: input, shape index: {}]   ;;  %s1851_s5 = inlined_call_operand.vmem [shape: bf16[32,128], index: 5, kind: input, shape index: {}]   ;;  %s1852_s6 = inlined_call_operand.vmem [shape: f32[5,512], index: 6, kind: input, shape index: {}]   ;;  %s1853_s7 = inlined_call_operand.vmem [shape: f32[16,4], index: 7, kind: output, shape index: {}]  }
   0x1   :  { %13 = vsyncpa [#allocation5], 0  ;;  %s1704_s24 = smov 0  }
   0x2 LB: > { %s1655_s25 = smov [#allocation2]   ;;  %s1710_s27 = sadd.s32 4294967295, %s1653_s24   ;;  %s1653_s24 = sphi %s1704_s24, %s19_s24  }
   0x3   : > { %s217_s26 = sshll.u32 %s1655_s25, 4  ;;  %p1278_p0 = scmp.ge.s32.totalorder %s1653_s24, 1  ;;  %s218_s26 = int_to_ptr.vmem [resolvable:$true] %s217_s26 }
   0x4   : > { %p202_p1 = scmp.lt.s32.totalorder %s1653_s24, 3  ;;  %p1473_p3 = scmp.eq.s32.totalorder %s1710_s27, 0 }
   0x5   : > { %s1656_s29 = smov [#allocation4]   ;;  %s1598_s9 = scalar_lea.vmem %s218_s26, 4096 }
   0x6   : > { %p1714_p2 = pnand %p1278_p0, %p202_p1  ;;  %s230_s30 = sshll.u32 %s1656_s29, 4  ;;  %s231_s30 = int_to_ptr.vmem [resolvable:$true] %s230_s30 }
   0x7   : > { %p1599_p7 = scmp.ne.s32.totalorder %s218_s26, %s1598_s9  ;;  %p1606_p10 = scmp.lt.s32.totalorder %s218_s26, %s218_s26 }
   0x8   : > { %p1466_p4 = pneg %p1714_p2  ;;  %p1607_p11 = scmp.lt.s32.totalorder %s1598_s9, %s1598_s9 }
   0xa   : > { %p1723_p5 = pnand %p1473_p3, %p1466_p4  ;;  %p1608_p12 = por %p1607_p11, %p1606_p10 }
   0xc   : > { %p1589_p6 = pneg %p1723_p5 }
   0xe   : > { %p1601_p8 = pnand %p1599_p7, %p1589_p6 }
  0x10   : > { %p1602_p9 = pneg %p1601_p8 }
  0x12   : > { %p1609_p13 = pnand %p1608_p12, %p1602_p9 }
  0x14   : > { %1612 = shalt.err (!%p1609_p13)
}
  0x15   : > { %s1657_s10 = smov 256   ;;  %s1658_s11 = smov 16  }
  0x16   : > { %1469 = dma.hbm_to_vmem [thread:$0]  (!%p1723_p5), %s1848_s2, 4096, %s218_s26, [#allocation3], %s1657_s10, %s1657_s10, %s1658_s11  }
  0x17   : > { %s1624_s14 = scalar_lea.vmem %s231_s30, 4096  ;;  %p1632_p7 = scmp.lt.s32.totalorder %s231_s30, %s231_s30 }
  0x18   : > { %p1625_p0 = scmp.ne.s32.totalorder %s231_s30, %s1624_s14  ;;  %p1633_p8 = scmp.lt.s32.totalorder %s1624_s14, %s1624_s14 }
  0x1a   : > { %p1627_p1 = pnand %p1625_p0, %p1589_p6  ;;  %p1634_p10 = por %p1633_p8, %p1632_p7 }
  0x1c   : > { %p1628_p4 = pneg %p1627_p1 }
  0x1e   : > { %p1635_p9 = pnand %p1634_p10, %p1628_p4 }
  0x20   : > { %1638 = shalt.err (!%p1635_p9)
}
  0x21   : > { %s1659_s15 = smov 64   ;;  %s1660_s16 = smov 4  }
  0x22   : > { %1472 = dma.hbm_to_vmem [thread:$0]  (!%p1723_p5), %s1849_s3, 4096, %s231_s30, [#allocation5], %s1659_s15, %s1659_s15, %s1660_s16  }
  0x23   : > { %262 = sbr.rel (%p1714_p2) target bundleno = 1070 (0x42e), region = 48 }
  0x28   : > { %1644 = dma.done.wait (%p1473_p3), [#allocation3], 4096  }
  0x29   : > { %1646 = vsyncadd (%p1473_p3), [#allocation3], 4294963200 }
  0x2a   : > { %1648 = dma.done.wait (%p1473_p3), [#allocation5], 4096  }
  0x2b   : > { %1650 = vsyncadd (%p1473_p3), [#allocation5], 4294963200  ;;  %p296_p6 = scmp.lt.s32.totalorder %s1710_s27, 1  ;;  %v1661_v0 = vmov 0.0   ;;  %vm1662_vm0 = vmmov 0   ;;  %v1494_v1 = vld [vmem:[%s1847_s1] sm:$0xff]   ;;  %v313_v38 = vlaneseq }
  0x2c   : > { %1424 = vmatprep.subr.bf16.mxu0 %v1661_v0  ;;  %1426 = vmatprep.mubr.msk.bf16.mxu0 %vm1662_vm0, %v1661_v0  ;;  %vm323_vm1 = vcmask 130048   ;;  %v1495_v3 = vld [vmem:[#allocation2 + $0xe4] ss:$16 sps:$4 sm:$0xff]   ;;  %v1497_v4 = vld [vmem:[#allocation2 + $0xe8] ss:$16 sps:$4 sm:$0xff]   ;;  %v1663_v35 = vmov 0  }
  0x2d   : > { %s1857_s27 = smov (!%p296_p6, %s1710_s27), 1  ;;  %1425 = vmatpush3.bf16.msra.mxu0 %v1494_v1  ;;  %v1499_v5 = vld [vmem:[#allocation2 + $0xec] ss:$16 sps:$4 sm:$0xff]   ;;  %v1500_v6 = vld [vmem:[#allocation2 + $0xe0] ss:$16 sps:$4 sm:$0xff]   ;;  %579 = vmatprep.subr.bf16.mxu1 %v1495_v3  ;;  %v1769_v39 = vshrl.u32 %v313_v38, 7 }
  0x2e   : > { %s1285_s19 = sshll.u32 %s1857_s27, 2  ;;  %v1501_v7 = vld [vmem:[#allocation2 + $0xc4] ss:$16 sps:$4 sm:$0xff]   ;;  %620 = vmatprep.subr.bf16.mxu0 %v1499_v5  ;;  %v1503_v8 = vld [vmem:[#allocation2 + $0xc8] ss:$16 sps:$4 sm:$0xff]   ;;  %580 = vmatpush1.bf16.msra.mxu1 %v1500_v6  ;;  %vm1153_vm9 = vcmask 261120  }
  0x2f   : > { %s299_s22 = scalar_lea.vmem %s1846_s0, %s1285_s19  ;;  %v1505_v9 = vld [vmem:[#allocation2 + $0xcc] ss:$16 sps:$4 sm:$0xff]   ;;  %v1506_v10 = vld [vmem:[#allocation2 + $0xc0] ss:$16 sps:$4 sm:$0xff]   ;;  %581 = vmatprep.subr.bf16.mxu1 %v1501_v7  ;;  %v1507_v11 = vld [vmem:[#allocation2 + $0xa4] ss:$16 sps:$4 sm:$0xff]   ;;  %611 = vmatprep.mubr.bf16.mxu1 %v1663_v35 }
  0x30   : > { %v310_v2 = vld [vmem:[%s299_s22] sm:$0xf]  ;;  %v1511_v12 = vld [vmem:[#allocation2 + $0xac] ss:$16 sps:$4 sm:$0xff]   ;;  %v1509_v13 = vld [vmem:[#allocation2 + $0xa8] ss:$16 sps:$4 sm:$0xff]  }
  0x31   : > { %1427 = vmatmul.mubr.msk.bf16.vlgmr.msra.gmra.mxu0 %vm323_vm1, %v310_v2  ;;  %v1512_v14 = vld [vmem:[#allocation2 + $0xa0] ss:$16 sps:$4 sm:$0xff]   ;;  %v1513_v15 = vld [vmem:[#allocation2 + $0x84] ss:$16 sps:$4 sm:$0xff]   ;;  %v1517_v16 = vld [vmem:[#allocation2 + $0x8c] ss:$16 sps:$4 sm:$0xff]  }
  0x32   : > { %621 = vmatpush1.bf16.msra.mxu0 %v1497_v4  ;;  %582 = vmatpush1.bf16.msra.mxu1 %v1506_v10  ;;  %v1515_v17 = vld [vmem:[#allocation2 + $0x88] ss:$16 sps:$4 sm:$0xff]   ;;  %v1518_v18 = vld [vmem:[#allocation2 + $0x80] ss:$16 sps:$4 sm:$0xff]   ;;  %v1519_v19 = vld [vmem:[#allocation2 + $0x64] ss:$16 sps:$4 sm:$0xff]  }
  0x33   : > { %622 = vmatprep.subr.bf16.mxu0 %v1505_v9  ;;  %583 = vmatprep.subr.bf16.mxu1 %v1507_v11  ;;  %v1523_v20 = vld [vmem:[#allocation2 + $0x6c] ss:$16 sps:$4 sm:$0xff]   ;;  %v1521_v21 = vld [vmem:[#allocation2 + $0x68] ss:$16 sps:$4 sm:$0xff]   ;;  %v1524_v22 = vld [vmem:[#allocation2 + $0x60] ss:$16 sps:$4 sm:$0xff]  }
  0x34   : > { %v1525_v23 = vld [vmem:[#allocation2 + $0x44] ss:$16 sps:$4 sm:$0xff]   ;;  %v1529_v24 = vld [vmem:[#allocation2 + $0x4c] ss:$16 sps:$4 sm:$0xff]   ;;  %v1527_v25 = vld [vmem:[#allocation2 + $0x48] ss:$16 sps:$4 sm:$0xff]   ;;  %652 = vmatprep.mubr.bf16.mxu0 %v1663_v35 }
  0x35   : > { %v1530_v26 = vld [vmem:[#allocation2 + $0x40] ss:$16 sps:$4 sm:$0xff]   ;;  %v1531_v27 = vld [vmem:[#allocation2 + $0x24] ss:$16 sps:$4 sm:$0xff]   ;;  %v1535_v28 = vld [vmem:[#allocation2 + $0x2c] ss:$16 sps:$4 sm:$0xff]  }
  0x36   : > { %623 = vmatpush1.bf16.msra.mxu0 %v1503_v8  ;;  %584 = vmatpush1.bf16.msra.mxu1 %v1512_v14  ;;  %v1533_v29 = vld [vmem:[#allocation2 + $0x28] ss:$16 sps:$4 sm:$0xff]   ;;  %v1536_v30 = vld [vmem:[#allocation2 + $0x20] ss:$16 sps:$4 sm:$0xff]   ;;  %v1537_v31 = vld [vmem:[#allocation2 + $0x4] ss:$16 sps:$4 sm:$0xff]  }
  0x37   : > { %624 = vmatprep.subr.bf16.mxu0 %v1511_v12  ;;  %585 = vmatprep.subr.bf16.mxu1 %v1513_v15  ;;  %v1541_v32 = vld [vmem:[#allocation2 + $0xc] ss:$16 sps:$4 sm:$0xff]   ;;  %v1539_v33 = vld [vmem:[#allocation2 + $0x8] ss:$16 sps:$4 sm:$0xff]   ;;  %v1542_v34 = vld [vmem:[#allocation2] ss:$16 sps:$4 sm:$0xff]  }
  0x38   : > { %v1543_v36 = vld [vmem:[#allocation4 + $0x78] sm:$0xff]   ;;  %v315_v40 = vsub.s32 0, %v1769_v39  ;;  %v1775_v41 = vld [vmem:[%s1852_s6] sm:$0x1f]  ;;  %v1547_v52 = vld [vmem:[#allocation4 + $0x70] sm:$0xff]   ;;  %s1286_s11 = sshll.u32 %s1857_s27, 3 }
  0x39   : > { %v1544_v37 = vld [vmem:[#allocation4 + $0xf8] sm:$0xff]   ;;  %v1548_v53 = vld [vmem:[#allocation4 + $0xf0] sm:$0xff]   ;;  %v1551_v57 = vld [vmem:[#allocation4 + $0x68] sm:$0xff]   ;;  %s303_s14 = scalar_lea.vmem %s1853_s7, %s1286_s11  ;;  %vm1199_vm10 = vcmask 31744  }
  0x3a   : > { %625 = vmatpush1.bf16.msra.mxu0 %v1509_v13  ;;  %586 = vmatpush1.bf16.msra.mxu1 %v1518_v18  ;;  %v316_v42 = vrot.slane %v1775_v41, %v315_v40  ;;  %v1545_v49 = vld [vmem:[#allocation4 + $0x38] sm:$0xff]   ;;  %v1549_v55 = vld [vmem:[#allocation4 + $0x30] sm:$0xff]   ;;  %v1552_v58 = vld [vmem:[#allocation4 + $0xe8] sm:$0xff]   ;;  %v405_v18 = vsub.s32 1, %v1769_v39 }
  0x3b   : > { %626 = vmatprep.subr.bf16.mxu0 %v1517_v16  ;;  %587 = vmatprep.subr.bf16.mxu1 %v1519_v19  ;;  %v1546_v50 = vld [vmem:[#allocation4 + $0xb8] sm:$0xff]   ;;  %v1550_v56 = vld [vmem:[#allocation4 + $0xb0] sm:$0xff]   ;;  %v1553_v59 = vld [vmem:[#allocation4 + $0x28] sm:$0xff]  }
  0x3c   : > { %v1554_v60 = vld [vmem:[#allocation4 + $0xa8] sm:$0xff]   ;;  %v1555_v61 = vld [vmem:[#allocation4 + $0x60] sm:$0xff]   ;;  %v1559_v2 = vld [vmem:[#allocation4 + $0x58] sm:$0xff]  }
  0x3d   : > { %v1556_v62 = vld [vmem:[#allocation4 + $0xe0] sm:$0xff]   ;;  %v1560_v3 = vld [vmem:[#allocation4 + $0xd8] sm:$0xff]   ;;  %v1563_v6 = vld [vmem:[#allocation4 + $0x50] sm:$0xff]  }
  0x3e   : > { %627 = vmatpush1.bf16.msra.mxu0 %v1515_v17  ;;  %588 = vmatpush1.bf16.msra.mxu1 %v1524_v22  ;;  %v1557_v63 = vld [vmem:[#allocation4 + $0x20] sm:$0xff]   ;;  %v1561_v4 = vld [vmem:[#allocation4 + $0x18] sm:$0xff]   ;;  %v1564_v7 = vld [vmem:[#allocation4 + $0xd0] sm:$0xff]   ;;  %v406_v22 = vrot.slane %v1775_v41, %v405_v18 }
  0x3f   : > { %628 = vmatprep.subr.bf16.mxu0 %v1523_v20  ;;  %589 = vmatprep.subr.bf16.mxu1 %v1525_v23  ;;  %v1558_v1 = vld [vmem:[#allocation4 + $0xa0] sm:$0xff]   ;;  %v1562_v5 = vld [vmem:[#allocation4 + $0x98] sm:$0xff]   ;;  %v1565_v8 = vld [vmem:[#allocation4 + $0x10] sm:$0xff]  }
  0x40   : > { %v1566_v9 = vld [vmem:[#allocation4 + $0x90] sm:$0xff]   ;;  %v1567_v10 = vld [vmem:[#allocation4 + $0x48] sm:$0xff]   ;;  %v1571_v14 = vld [vmem:[#allocation4 + $0x40] sm:$0xff]  }
  0x41   : > { %v1568_v11 = vld [vmem:[#allocation4 + $0xc8] sm:$0xff]   ;;  %v1572_v15 = vld [vmem:[#allocation4 + $0xc0] sm:$0xff]   ;;  %v308_v19 = vld [vmem:[%s1852_s6 + $0x10] sm:$0x1f] }
  0x42   : > { %629 = vmatpush1.bf16.msra.mxu0 %v1521_v21  ;;  %590 = vmatpush1.bf16.msra.mxu1 %v1530_v26  ;;  %v1569_v12 = vld [vmem:[#allocation4 + $0x8] sm:$0xff]   ;;  %v1573_v16 = vld [vmem:[#allocation4] sm:$0xff]   ;;  %v309_v21 = vld [vmem:[%s1852_s6 + $0x18] sm:$0x1f]  ;;  %v414_v23 = vrot.slane %v308_v19, %v405_v18 }
  0x43   : > { %630 = vmatprep.subr.bf16.mxu0 %v1529_v24  ;;  %591 = vmatprep.subr.bf16.mxu1 %v1531_v27  ;;  %v1570_v13 = vld [vmem:[#allocation4 + $0x88] sm:$0xff]   ;;  %v1574_v17 = vld [vmem:[#allocation4 + $0x80] sm:$0xff]  }
  0x44   : > { %v307_v20 = vld [vmem:[%s1852_s6 + $0x8] sm:$0x1f] }
  0x45   : > { %v410_v24 = vrot.slane %v307_v20, %v405_v18 }
  0x46   : > { %631 = vmatpush1.bf16.msra.mxu0 %v1527_v25  ;;  %592 = vmatpush1.bf16.msra.mxu1 %v1536_v30  ;;  %v418_v25 = vrot.slane %v309_v21, %v405_v18 }
  0x47   : > { %632 = vmatprep.subr.bf16.mxu0 %v1535_v28  ;;  %593 = vmatprep.subr.bf16.mxu1 %v1537_v31 }
  0x4a   : > { %633 = vmatpush1.bf16.msra.mxu0 %v1533_v29  ;;  %594 = vmatpush1.bf16.msra.mxu1 %v1542_v34 }
  0x4b   : > { %634 = vmatprep.subr.bf16.mxu0 %v1541_v32  ;;  %1368 = vmatprep.subr.bf16.mxu1 %v1543_v36 }
  0x4e   : > { %635 = vmatpush1.bf16.msra.mxu0 %v1539_v33 }
  0x4f   : > { %1390 = vmatprep.subr.bf16.mxu0 %v1544_v37 }
  0xf1   : > { %v361_v43 = vpop.f32.mrf.mxu0 }
  0xf2   : > { %v362_v44 = vadd.f32 %v361_v43, %v316_v42 }
  0xf3   : > { %v1428_v45 = vpop.f32.mrf.mxu0 }
  0xf4   : > { %v367_v46 = vpack.c.bf16 %v362_v44, %v362_v44 }
  0xf5   : > { %v364_v47 = vpop.f32.mrf.mxu0 }
  0xf6   : > { %v369_v48 = vmul.bf16 1009007652, %v367_v46  ;;  %vm368_vm2 = vcmp.ge.bf16.partialorder %v367_v46, 0 }
  0xf7   : > { %v1429_v51 = vpop.f32.mrf.mxu0 }
  0xf8   : > { %v370_v54 = vsel %vm368_vm2, %v367_v46, %v369_v48  ;;  %v1575_v48 = vld [vmem:[%s1850_s4 + $0x38] sm:$0xff]  }
  0xf9   : > { %612 = vmatmul.mubr.bf16.vlgmr.msra.gmra.mxu1 %v370_v54  ;;  %653 = vmatmul.mubr.bf16.vlgmr.msra.gmra.mxu0 %v370_v54  ;;  %v1577_v54 = vld [vmem:[%s1850_s4 + $0x28] sm:$0xff]  }
  0xfa   : > { %1369 = vmatpush3.bf16.msra.mxu1 %v1545_v49  ;;  %1391 = vmatpush3.bf16.msra.mxu0 %v1546_v50 }
  0xfb   : > { %1370 = vmatprep.subr.bf16.mxu1 %v1547_v52  ;;  %1392 = vmatprep.subr.bf16.mxu0 %v1548_v53  ;;  %v1576_v53 = vld [vmem:[%s1850_s4 + $0x30] sm:$0xff]  }
  0xfe   : > { %1371 = vmatpush3.bf16.msra.mxu1 %v1549_v55  ;;  %1393 = vmatpush3.bf16.msra.mxu0 %v1550_v56  ;;  %v1578_v55 = vld [vmem:[%s1850_s4 + $0x20] sm:$0xff]   ;;  %v1579_v56 = vld [vmem:[%s1850_s4 + $0x18] sm:$0xff]  }
  0xff   : > { %1372 = vmatprep.subr.bf16.mxu1 %v1551_v57  ;;  %1394 = vmatprep.subr.bf16.mxu0 %v1552_v58  ;;  %v1580_v57 = vld [vmem:[%s1850_s4 + $0x10] sm:$0xff]   ;;  %v1581_v58 = vld [vmem:[%s1850_s4 + $0x8] sm:$0xff]  }
 0x102   : > { %1373 = vmatpush3.bf16.msra.mxu1 %v1553_v59  ;;  %1395 = vmatpush3.bf16.msra.mxu0 %v1554_v60  ;;  %v1582_v59 = vld [vmem:[%s1850_s4] sm:$0xff]   ;;  %v743_v60 = vsub.s32 2, %v1769_v39 }
 0x103   : > { %1374 = vmatprep.subr.bf16.mxu1 %v1555_v61  ;;  %1396 = vmatprep.subr.bf16.mxu0 %v1556_v62 }
 0x106   : > { %1375 = vmatpush3.bf16.msra.mxu1 %v1557_v63  ;;  %1397 = vmatpush3.bf16.msra.mxu0 %v1558_v1  ;;  %v744_v63 = vrot.slane %v1775_v41, %v743_v60 }
 0x107   : > { %1376 = vmatprep.subr.bf16.mxu1 %v1559_v2  ;;  %1398 = vmatprep.subr.bf16.mxu0 %v1560_v3 }
 0x10a   : > { %1377 = vmatpush3.bf16.msra.mxu1 %v1561_v4  ;;  %1399 = vmatpush3.bf16.msra.mxu0 %v1562_v5 }
 0x10b   : > { %1378 = vmatprep.subr.bf16.mxu1 %v1563_v6  ;;  %1400 = vmatprep.subr.bf16.mxu0 %v1564_v7 }
 0x10e   : > { %1379 = vmatpush3.bf16.msra.mxu1 %v1565_v8  ;;  %1401 = vmatpush3.bf16.msra.mxu0 %v1566_v9 }
 0x10f   : > { %1380 = vmatprep.subr.bf16.mxu1 %v1567_v10  ;;  %1402 = vmatprep.subr.bf16.mxu0 %v1568_v11 }
 0x112   : > { %1381 = vmatpush3.bf16.msra.mxu1 %v1569_v12  ;;  %1403 = vmatpush3.bf16.msra.mxu0 %v1570_v13 }
 0x113   : > { %1382 = vmatprep.subr.bf16.mxu1 %v1571_v14  ;;  %1404 = vmatprep.subr.bf16.mxu0 %v1572_v15  ;;  %v1583_v14 = vld [vmem:[%s1851_s5 + $0x8] sm:$0xff]   ;;  %v1584_v15 = vld [vmem:[%s1851_s5] sm:$0xff]  }
 0x116   : > { %1383 = vmatpush3.bf16.msra.mxu1 %v1573_v16  ;;  %1405 = vmatpush3.bf16.msra.mxu0 %v1574_v17  ;;  %v1039_v16 = vsub.s32 3, %v1769_v39 }
 0x117   : > { %1430 = vmatprep.subr.bf16.mxu1 %v1661_v0  ;;  %1450 = vmatprep.subr.bf16.mxu0 %v1661_v0 }
 0x118   : > { %v1040_v17 = vrot.slane %v1775_v41, %v1039_v16 }
 0x1b9   : > { %v613_v26 = vpop.f32.mrf.mxu1  ;;  %v654_v27 = vpop.f32.mrf.mxu0 }
 0x1ba   : > { %v614_v28 = vadd.f32 %v613_v26, %v406_v22  ;;  %v655_v29 = vadd.f32 %v654_v27, %v414_v23 }
 0x1bb   : > { %v615_v30 = vpop.f32.mrf.mxu1  ;;  %v656_v31 = vpop.f32.mrf.mxu0 }
 0x1bc   : > { %v661_v32 = vpack.c.bf16 %v614_v28, %v614_v28  ;;  %v663_v33 = vpack.c.bf16 %v655_v29, %v655_v29  ;;  %v616_v34 = vadd.f32 %v615_v30, %v410_v24  ;;  %v657_v35 = vadd.f32 %v656_v31, %v418_v25 }
 0x1bd   : > { %v617_v36 = vpop.f32.mrf.mxu1  ;;  %v658_v37 = vpop.f32.mrf.mxu0  ;;  %v1139_v25 = vsub.s32 4, %v1769_v39 }
 0x1be   : > { %v662_v38 = vpack.c.bf16 %v616_v34, %v616_v34  ;;  %v664_v40 = vpack.c.bf16 %v657_v35, %v657_v35  ;;  %vm665_vm3 = vcmp.ge.bf16.partialorder %v661_v32, 0  ;;  %v669_v44 = vmul.bf16 1009007652, %v661_v32 }
 0x1bf   : > { %v618_v42 = vpop.f32.mrf.mxu1  ;;  %v659_v43 = vpop.f32.mrf.mxu0  ;;  %vm667_vm4 = vcmp.ge.bf16.partialorder %v663_v33, 0  ;;  %v671_v45 = vmul.bf16 1009007652, %v663_v33  ;;  %v1140_v26 = vrot.slane %v1775_v41, %v1139_v25 }
 0x1c0   : > { %v670_v46 = vmul.bf16 1009007652, %v662_v38  ;;  %v672_v47 = vmul.bf16 1009007652, %v664_v40  ;;  %vm666_vm5 = vcmp.ge.bf16.partialorder %v662_v38, 0  ;;  %vm668_vm6 = vcmp.ge.bf16.partialorder %v664_v40, 0 }
 0x1c1   : > { %v673_v51 = vsel %vm665_vm3, %v661_v32, %v669_v44  ;;  %v675_v52 = vsel %vm667_vm4, %v663_v33, %v671_v45 }
 0x1c2   : > { %v674_v49 = vsel %vm666_vm5, %v662_v38, %v670_v46  ;;  %v676_v50 = vsel %vm668_vm6, %v664_v40, %v672_v47 }
 0x1c3   : > { %969 = vmatprep.mubr.bf16.mxu1 %v674_v49  ;;  %1009 = vmatprep.mubr.bf16.mxu0 %v676_v50 }
 0x1c4   : > { %970 = vmatmul.mubr.bf16.vlgmr.msra.gmra.mxu1 %v673_v51  ;;  %1010 = vmatmul.mubr.bf16.vlgmr.msra.gmra.mxu0 %v675_v52 }
 0x1c5   : > { %1431 = vmatpush3.bf16.msra.mxu1 %v1575_v48  ;;  %1446 = vmatprep.mubr.msk.bf16.mxu1 %vm1662_vm0, %v1661_v0 }
 0x1c6   : > { %1432 = vmatprep.subr.bf16.mxu1 %v1661_v0  ;;  %1454 = vmatprep.mubr.msk.bf16.mxu0 %vm1662_vm0, %v1661_v0 }
 0x1c7   : > { %1451 = vmatpush3.bf16.msra.mxu0 %v1583_v14 }
 0x1c8   : > { %1452 = vmatprep.subr.bf16.mxu0 %v1661_v0 }
 0x1c9   : > { %1433 = vmatpush3.bf16.msra.mxu1 %v1576_v53 }
 0x1ca   : > { %1434 = vmatprep.subr.bf16.mxu1 %v1661_v0 }
 0x1cb   : > { %1453 = vmatpush3.bf16.msra.mxu0 %v1584_v15 }
 0x1cd   : > { %1435 = vmatpush3.bf16.msra.mxu1 %v1577_v54 }
 0x1ce   : > { %1436 = vmatprep.subr.bf16.mxu1 %v1661_v0 }
 0x1d1   : > { %1437 = vmatpush3.bf16.msra.mxu1 %v1578_v55 }
 0x1d2   : > { %1438 = vmatprep.subr.bf16.mxu1 %v1661_v0 }
 0x1d5   : > { %1439 = vmatpush3.bf16.msra.mxu1 %v1579_v56 }
 0x1d6   : > { %1440 = vmatprep.subr.bf16.mxu1 %v1661_v0 }
 0x1d9   : > { %1441 = vmatpush3.bf16.msra.mxu1 %v1580_v57 }
 0x1da   : > { %1442 = vmatprep.subr.bf16.mxu1 %v1661_v0 }
 0x1dd   : > { %1443 = vmatpush3.bf16.msra.mxu1 %v1581_v58 }
 0x1de   : > { %1444 = vmatprep.subr.bf16.mxu1 %v1661_v0 }
 0x1e1   : > { %1445 = vmatpush3.bf16.msra.mxu1 %v1582_v59 }
 0x284   : > { %v1384_v61 = vpop.f32.mrf.mxu1  ;;  %v1406_v62 = vpop.f32.mrf.mxu0 }
 0x286   : > { %v1385_v1 = vpop.f32.mrf.mxu1  ;;  %v1407_v2 = vpop.f32.mrf.mxu0 }
 0x287   : > { %v1386_v3 = vadd.f32 %v1385_v1, %v1384_v61  ;;  %v1408_v7 = vadd.f32 %v1407_v2, %v1406_v62 }
 0x288   : > { %v1387_v4 = vpop.f32.mrf.mxu1  ;;  %v1409_v5 = vpop.f32.mrf.mxu0 }
 0x289   : > { %v972_v6 = vadd.f32 %v1386_v3, %v744_v63 }
 0x28a   : > { %v1388_v8 = vpop.f32.mrf.mxu1  ;;  %v1410_v9 = vpop.f32.mrf.mxu0 }
 0x28b   : > { %v1012_v10 = vadd.f32 %v1408_v7, %v972_v6 }
 0x28d   : > { %v1017_v11 = vpack.c.bf16 %v1012_v10, %v1012_v10 }
 0x28f   : > { %v1019_v12 = vmul.bf16 1009007652, %v1017_v11  ;;  %vm1018_vm7 = vcmp.ge.bf16.partialorder %v1017_v11, 0 }
 0x291   : > { %v1020_v13 = vsel %vm1018_vm7, %v1017_v11, %v1019_v12 }
 0x292   : > { %1447 = vmatmul.mubr.bf16.vlgmr.msra.gmra.mxu1 %v1020_v13 }
 0x352   : > { %v1123_v18 = vpop.f32.mrf.mxu1 }
 0x353   : > { %v1124_v19 = vadd.f32 %v1123_v18, %v1040_v17 }
 0x354   : > { %v1448_v20 = vpop.f32.mrf.mxu1 }
 0x355   : > { %v1129_v21 = vpack.c.bf16 %v1124_v19, %v1124_v19 }
 0x356   : > { %v1126_v22 = vpop.f32.mrf.mxu1 }
 0x357   : > { %vm1130_vm8 = vcmp.ge.bf16.partialorder %v1129_v21, 0  ;;  %v1131_v23 = vmul.bf16 1009007652, %v1129_v21 }
 0x358   : > { %v1449_v24 = vpop.f32.mrf.mxu1 }
 0x359   : > { %v1132_v0 = vsel %vm1130_vm8, %v1129_v21, %v1131_v23 }
 0x35a   : > { %1455 = vmatmul.mubr.msk.bf16.vlgmr.msra.gmra.mxu0 %vm1153_vm9, %v1132_v0 }
 0x41a   : > { %v1191_v27 = vpop.f32.mrf.mxu0 }
 0x41b   : > { %v1192_v28 = vadd.f32 %v1191_v27, %v1140_v26 }
 0x41c   : > { %v1456_v29 = vpop.f32.mrf.mxu0 }
 0x41d   : > { %1585 = vtanh.f32 %v1192_v28 }
 0x41e   : > { %v1194_v30 = vpop.f32.mrf.mxu0 }
 0x420   : > { %v1457_v31 = vpop.f32.mrf.mxu0 }
 0x42a   : > { %v1586_v32 = vpop.eup %1585 }
 0x42b   : > { %v1198_v33 = vmul.f32 2.0, %v1586_v32 }
 0x42d   : > { %1200 = vst.msk [vmem:[%s303_s14] sm:$0xff] %vm1199_vm10, %v1198_v33 }
 0x42e PF: > { %s19_s24 = sadd.s32 1, %s1653_s24  }
 0x42f   : > { %p16_p2 = scmp.ge.s32.totalorder %s19_s24, 4  }
 0x431   :  { %18 = sbr.rel (!%p16_p2) target bundleno = 2 (0x2), region = 87 }
 0x436   :  { %1220 = vsyncpa [#allocation3], 1 }
 0x437   :  { %1222 = vsyncpa [#allocation3 + $0x1], 1 }
 0x438   :  { %1223 = vsyncpa [#allocation5], 1 }

// kernel: tpu_custom_call.1
= control target key start
LH: loop header
LB: loop body
LE: loop exit
PB: predicated region body
PF: predicated region fallthrough
CT: control target
= control target key end

     0   :  { %12 = vsyncpa [#allocation3], 0  ;;  %s1846_s0 = inlined_call_operand.vmem [shape: bf16[16,16], index: 0, kind: input, shape index: {}]   ;;  %s1847_s1 = inlined_call_operand.vmem [shape: bf16[16,128], index: 1, kind: input, shape index: {}]   ;;  %s1848_s2 = inlined_call_operand.hbm [shape: bf16[128,512], index: 2, kind: input, shape index: {}]   ;;  %s1849_s3 = inlined_call_operand.hbm [shape: bf16[512,128], index: 3, kind: input, shape index: {}]   ;;  %s1850_s4 = inlined_call_operand.vmem [shape: bf16[128,32], index: 4, kind: input, shape index: {}]   ;;  %s1851_s5 = inlined_call_operand.vmem [shape: bf16[32,128], index: 5, kind: input, shape index: {}]   ;;  %s1852_s6 = inlined_call_operand.vmem [shape: f32[5,512], index: 6, kind: input, shape index: {}]   ;;  %s1853_s7 = inlined_call_operand.vmem [shape: f32[16,4], index: 7, kind: output, shape index: {}]  }
   0x1   :  { %13 = vsyncpa [#allocation5], 0  ;;  %s1704_s24 = smov 0  }
   0x2 LB: > { %s1655_s25 = smov [#allocation2]   ;;  %s1710_s27 = sadd.s32 4294967295, %s1653_s24   ;;  %s1653_s24 = sphi %s1704_s24, %s19_s24  }
   0x3   : > { %s217_s26 = sshll.u32 %s1655_s25, 4  ;;  %p1278_p0 = scmp.ge.s32.totalorder %s1653_s24, 1  ;;  %s218_s26 = int_to_ptr.vmem [resolvable:$true] %s217_s26 }
   0x4   : > { %p202_p1 = scmp.lt.s32.totalorder %s1653_s24, 3  ;;  %p1473_p3 = scmp.eq.s32.totalorder %s1710_s27, 0 }
   0x5   : > { %s1656_s29 = smov [#allocation4]   ;;  %s1598_s9 = scalar_lea.vmem %s218_s26, 4096 }
   0x6   : > { %p1714_p2 = pnand %p1278_p0, %p202_p1  ;;  %s230_s30 = sshll.u32 %s1656_s29, 4  ;;  %s231_s30 = int_to_ptr.vmem [resolvable:$true] %s230_s30 }
   0x7   : > { %p1599_p7 = scmp.ne.s32.totalorder %s218_s26, %s1598_s9  ;;  %p1606_p10 = scmp.lt.s32.totalorder %s218_s26, %s218_s26 }
   0x8   : > { %p1466_p4 = pneg %p1714_p2  ;;  %p1607_p11 = scmp.lt.s32.totalorder %s1598_s9, %s1598_s9 }
   0xa   : > { %p1723_p5 = pnand %p1473_p3, %p1466_p4  ;;  %p1608_p12 = por %p1607_p11, %p1606_p10 }
   0xc   : > { %p1589_p6 = pneg %p1723_p5 }
   0xe   : > { %p1601_p8 = pnand %p1599_p7, %p1589_p6 }
  0x10   : > { %p1602_p9 = pneg %p1601_p8 }
  0x12   : > { %p1609_p13 = pnand %p1608_p12, %p1602_p9 }
  0x14   : > { %1612 = shalt.err (!%p1609_p13)
}
  0x15   : > { %s1657_s10 = smov 256   ;;  %s1658_s11 = smov 16  }
  0x16   : > { %1469 = dma.hbm_to_vmem [thread:$0]  (!%p1723_p5), %s1848_s2, 4096, %s218_s26, [#allocation3], %s1657_s10, %s1657_s10, %s1658_s11  }
  0x17   : > { %s1624_s14 = scalar_lea.vmem %s231_s30, 4096  ;;  %p1632_p7 = scmp.lt.s32.totalorder %s231_s30, %s231_s30 }
  0x18   : > { %p1625_p0 = scmp.ne.s32.totalorder %s231_s30, %s1624_s14  ;;  %p1633_p8 = scmp.lt.s32.totalorder %s1624_s14, %s1624_s14 }
  0x1a   : > { %p1627_p1 = pnand %p1625_p0, %p1589_p6  ;;  %p1634_p10 = por %p1633_p8, %p1632_p7 }
  0x1c   : > { %p1628_p4 = pneg %p1627_p1 }
  0x1e   : > { %p1635_p9 = pnand %p1634_p10, %p1628_p4 }
  0x20   : > { %1638 = shalt.err (!%p1635_p9)
}
  0x21   : > { %s1659_s15 = smov 64   ;;  %s1660_s16 = smov 4  }
  0x22   : > { %1472 = dma.hbm_to_vmem [thread:$0]  (!%p1723_p5), %s1849_s3, 4096, %s231_s30, [#allocation5], %s1659_s15, %s1659_s15, %s1660_s16  }
  0x23   : > { %262 = sbr.rel (%p1714_p2) target bundleno = 1070 (0x42e), region = 48 }
  0x28   : > { %1644 = dma.done.wait (%p1473_p3), [#allocation3], 4096  }
  0x29   : > { %1646 = vsyncadd (%p1473_p3), [#allocation3], 4294963200 }
  0x2a   : > { %1648 = dma.done.wait (%p1473_p3), [#allocation5], 4096  }
  0x2b   : > { %1650 = vsyncadd (%p1473_p3), [#allocation5], 4294963200  ;;  %p296_p6 = scmp.lt.s32.totalorder %s1710_s27, 1  ;;  %v1661_v0 = vmov 0.0   ;;  %vm1662_vm0 = vmmov 0   ;;  %v1494_v1 = vld [vmem:[%s1847_s1] sm:$0xff]   ;;  %v313_v38 = vlaneseq }
  0x2c   : > { %1424 = vmatprep.subr.bf16.mxu0 %v1661_v0  ;;  %1426 = vmatprep.mubr.msk.bf16.mxu0 %vm1662_vm0, %v1661_v0  ;;  %vm323_vm1 = vcmask 130048   ;;  %v1495_v3 = vld [vmem:[#allocation2 + $0xe4] ss:$16 sps:$4 sm:$0xff]   ;;  %v1497_v4 = vld [vmem:[#allocation2 + $0xe8] ss:$16 sps:$4 sm:$0xff]   ;;  %v1663_v35 = vmov 0  }
  0x2d   : > { %s1857_s27 = smov (!%p296_p6, %s1710_s27), 1  ;;  %1425 = vmatpush3.bf16.msra.mxu0 %v1494_v1  ;;  %v1499_v5 = vld [vmem:[#allocation2 + $0xec] ss:$16 sps:$4 sm:$0xff]   ;;  %v1500_v6 = vld [vmem:[#allocation2 + $0xe0] ss:$16 sps:$4 sm:$0xff]   ;;  %579 = vmatprep.subr.bf16.mxu1 %v1495_v3  ;;  %v1769_v39 = vshrl.u32 %v313_v38, 7 }
  0x2e   : > { %s1285_s19 = sshll.u32 %s1857_s27, 2  ;;  %v1501_v7 = vld [vmem:[#allocation2 + $0xc4] ss:$16 sps:$4 sm:$0xff]   ;;  %620 = vmatprep.subr.bf16.mxu0 %v1499_v5  ;;  %v1503_v8 = vld [vmem:[#allocation2 + $0xc8] ss:$16 sps:$4 sm:$0xff]   ;;  %580 = vmatpush1.bf16.msra.mxu1 %v1500_v6  ;;  %vm1153_vm9 = vcmask 261120  }
  0x2f   : > { %s299_s22 = scalar_lea.vmem %s1846_s0, %s1285_s19  ;;  %v1505_v9 = vld [vmem:[#allocation2 + $0xcc] ss:$16 sps:$4 sm:$0xff]   ;;  %v1506_v10 = vld [vmem:[#allocation2 + $0xc0] ss:$16 sps:$4 sm:$0xff]   ;;  %581 = vmatprep.subr.bf16.mxu1 %v1501_v7  ;;  %v1507_v11 = vld [vmem:[#allocation2 + $0xa4] ss:$16 sps:$4 sm:$0xff]   ;;  %611 = vmatprep.mubr.bf16.mxu1 %v1663_v35 }
  0x30   : > { %v310_v2 = vld [vmem:[%s299_s22] sm:$0xf]  ;;  %v1511_v12 = vld [vmem:[#allocation2 + $0xac] ss:$16 sps:$4 sm:$0xff]   ;;  %v1509_v13 = vld [vmem:[#allocation2 + $0xa8] ss:$16 sps:$4 sm:$0xff]  }
  0x31   : > { %1427 = vmatmul.mubr.msk.bf16.vlgmr.msra.gmra.mxu0 %vm323_vm1, %v310_v2  ;;  %v1512_v14 = vld [vmem:[#allocation2 + $0xa0] ss:$16 sps:$4 sm:$0xff]   ;;  %v1513_v15 = vld [vmem:[#allocation2 + $0x84] ss:$16 sps:$4 sm:$0xff]   ;;  %v1517_v16 = vld [vmem:[#allocation2 + $0x8c] ss:$16 sps:$4 sm:$0xff]  }
  0x32   : > { %621 = vmatpush1.bf16.msra.mxu0 %v1497_v4  ;;  %582 = vmatpush1.bf16.msra.mxu1 %v1506_v10  ;;  %v1515_v17 = vld [vmem:[#allocation2 + $0x88] ss:$16 sps:$4 sm:$0xff]   ;;  %v1518_v18 = vld [vmem:[#allocation2 + $0x80] ss:$16 sps:$4 sm:$0xff]   ;;  %v1519_v19 = vld [vmem:[#allocation2 + $0x64] ss:$16 sps:$4 sm:$0xff]  }
  0x33   : > { %622 = vmatprep.subr.bf16.mxu0 %v1505_v9  ;;  %583 = vmatprep.subr.bf16.mxu1 %v1507_v11  ;;  %v1523_v20 = vld [vmem:[#allocation2 + $0x6c] ss:$16 sps:$4 sm:$0xff]   ;;  %v1521_v21 = vld [vmem:[#allocation2 + $0x68] ss:$16 sps:$4 sm:$0xff]   ;;  %v1524_v22 = vld [vmem:[#allocation2 + $0x60] ss:$16 sps:$4 sm:$0xff]  }
  0x34   : > { %v1525_v23 = vld [vmem:[#allocation2 + $0x44] ss:$16 sps:$4 sm:$0xff]   ;;  %v1529_v24 = vld [vmem:[#allocation2 + $0x4c] ss:$16 sps:$4 sm:$0xff]   ;;  %v1527_v25 = vld [vmem:[#allocation2 + $0x48] ss:$16 sps:$4 sm:$0xff]   ;;  %652 = vmatprep.mubr.bf16.mxu0 %v1663_v35 }
  0x35   : > { %v1530_v26 = vld [vmem:[#allocation2 + $0x40] ss:$16 sps:$4 sm:$0xff]   ;;  %v1531_v27 = vld [vmem:[#allocation2 + $0x24] ss:$16 sps:$4 sm:$0xff]   ;;  %v1535_v28 = vld [vmem:[#allocation2 + $0x2c] ss:$16 sps:$4 sm:$0xff]  }
  0x36   : > { %623 = vmatpush1.bf16.msra.mxu0 %v1503_v8  ;;  %584 = vmatpush1.bf16.msra.mxu1 %v1512_v14  ;;  %v1533_v29 = vld [vmem:[#allocation2 + $0x28] ss:$16 sps:$4 sm:$0xff]   ;;  %v1536_v30 = vld [vmem:[#allocation2 + $0x20] ss:$16 sps:$4 sm:$0xff]   ;;  %v1537_v31 = vld [vmem:[#allocation2 + $0x4] ss:$16 sps:$4 sm:$0xff]  }
  0x37   : > { %624 = vmatprep.subr.bf16.mxu0 %v1511_v12  ;;  %585 = vmatprep.subr.bf16.mxu1 %v1513_v15  ;;  %v1541_v32 = vld [vmem:[#allocation2 + $0xc] ss:$16 sps:$4 sm:$0xff]   ;;  %v1539_v33 = vld [vmem:[#allocation2 + $0x8] ss:$16 sps:$4 sm:$0xff]   ;;  %v1542_v34 = vld [vmem:[#allocation2] ss:$16 sps:$4 sm:$0xff]  }
  0x38   : > { %v1543_v36 = vld [vmem:[#allocation4 + $0x78] sm:$0xff]   ;;  %v315_v40 = vsub.s32 0, %v1769_v39  ;;  %v1775_v41 = vld [vmem:[%s1852_s6] sm:$0x1f]  ;;  %v1547_v52 = vld [vmem:[#allocation4 + $0x70] sm:$0xff]   ;;  %s1286_s11 = sshll.u32 %s1857_s27, 3 }
  0x39   : > { %v1544_v37 = vld [vmem:[#allocation4 + $0xf8] sm:$0xff]   ;;  %v1548_v53 = vld [vmem:[#allocation4 + $0xf0] sm:$0xff]   ;;  %v1551_v57 = vld [vmem:[#allocation4 + $0x68] sm:$0xff]   ;;  %s303_s14 = scalar_lea.vmem %s1853_s7, %s1286_s11  ;;  %vm1199_vm10 = vcmask 31744  }
  0x3a   : > { %625 = vmatpush1.bf16.msra.mxu0 %v1509_v13  ;;  %586 = vmatpush1.bf16.msra.mxu1 %v1518_v18  ;;  %v316_v42 = vrot.slane %v1775_v41, %v315_v40  ;;  %v1545_v49 = vld [vmem:[#allocation4 + $0x38] sm:$0xff]   ;;  %v1549_v55 = vld [vmem:[#allocation4 + $0x30] sm:$0xff]   ;;  %v1552_v58 = vld [vmem:[#allocation4 + $0xe8] sm:$0xff]   ;;  %v405_v18 = vsub.s32 1, %v1769_v39 }
  0x3b   : > { %626 = vmatprep.subr.bf16.mxu0 %v1517_v16  ;;  %587 = vmatprep.subr.bf16.mxu1 %v1519_v19  ;;  %v1546_v50 = vld [vmem:[#allocation4 + $0xb8] sm:$0xff]   ;;  %v1550_v56 = vld [vmem:[#allocation4 + $0xb0] sm:$0xff]   ;;  %v1553_v59 = vld [vmem:[#allocation4 + $0x28] sm:$0xff]  }
  0x3c   : > { %v1554_v60 = vld [vmem:[#allocation4 + $0xa8] sm:$0xff]   ;;  %v1555_v61 = vld [vmem:[#allocation4 + $0x60] sm:$0xff]   ;;  %v1559_v2 = vld [vmem:[#allocation4 + $0x58] sm:$0xff]  }
  0x3d   : > { %v1556_v62 = vld [vmem:[#allocation4 + $0xe0] sm:$0xff]   ;;  %v1560_v3 = vld [vmem:[#allocation4 + $0xd8] sm:$0xff]   ;;  %v1563_v6 = vld [vmem:[#allocation4 + $0x50] sm:$0xff]  }
  0x3e   : > { %627 = vmatpush1.bf16.msra.mxu0 %v1515_v17  ;;  %588 = vmatpush1.bf16.msra.mxu1 %v1524_v22  ;;  %v1557_v63 = vld [vmem:[#allocation4 + $0x20] sm:$0xff]   ;;  %v1561_v4 = vld [vmem:[#allocation4 + $0x18] sm:$0xff]   ;;  %v1564_v7 = vld [vmem:[#allocation4 + $0xd0] sm:$0xff]   ;;  %v406_v22 = vrot.slane %v1775_v41, %v405_v18 }
  0x3f   : > { %628 = vmatprep.subr.bf16.mxu0 %v1523_v20  ;;  %589 = vmatprep.subr.bf16.mxu1 %v1525_v23  ;;  %v1558_v1 = vld [vmem:[#allocation4 + $0xa0] sm:$0xff]   ;;  %v1562_v5 = vld [vmem:[#allocation4 + $0x98] sm:$0xff]   ;;  %v1565_v8 = vld [vmem:[#allocation4 + $0x10] sm:$0xff]  }
  0x40   : > { %v1566_v9 = vld [vmem:[#allocation4 + $0x90] sm:$0xff]   ;;  %v1567_v10 = vld [vmem:[#allocation4 + $0x48] sm:$0xff]   ;;  %v1571_v14 = vld [vmem:[#allocation4 + $0x40] sm:$0xff]  }
  0x41   : > { %v1568_v11 = vld [vmem:[#allocation4 + $0xc8] sm:$0xff]   ;;  %v1572_v15 = vld [vmem:[#allocation4 + $0xc0] sm:$0xff]   ;;  %v308_v19 = vld [vmem:[%s1852_s6 + $0x10] sm:$0x1f] }
  0x42   : > { %629 = vmatpush1.bf16.msra.mxu0 %v1521_v21  ;;  %590 = vmatpush1.bf16.msra.mxu1 %v1530_v26  ;;  %v1569_v12 = vld [vmem:[#allocation4 + $0x8] sm:$0xff]   ;;  %v1573_v16 = vld [vmem:[#allocation4] sm:$0xff]   ;;  %v309_v21 = vld [vmem:[%s1852_s6 + $0x18] sm:$0x1f]  ;;  %v414_v23 = vrot.slane %v308_v19, %v405_v18 }
  0x43   : > { %630 = vmatprep.subr.bf16.mxu0 %v1529_v24  ;;  %591 = vmatprep.subr.bf16.mxu1 %v1531_v27  ;;  %v1570_v13 = vld [vmem:[#allocation4 + $0x88] sm:$0xff]   ;;  %v1574_v17 = vld [vmem:[#allocation4 + $0x80] sm:$0xff]  }
  0x44   : > { %v307_v20 = vld [vmem:[%s1852_s6 + $0x8] sm:$0x1f] }
  0x45   : > { %v410_v24 = vrot.slane %v307_v20, %v405_v18 }
  0x46   : > { %631 = vmatpush1.bf16.msra.mxu0 %v1527_v25  ;;  %592 = vmatpush1.bf16.msra.mxu1 %v1536_v30  ;;  %v418_v25 = vrot.slane %v309_v21, %v405_v18 }
  0x47   : > { %632 = vmatprep.subr.bf16.mxu0 %v1535_v28  ;;  %593 = vmatprep.subr.bf16.mxu1 %v1537_v31 }
  0x4a   : > { %633 = vmatpush1.bf16.msra.mxu0 %v1533_v29  ;;  %594 = vmatpush1.bf16.msra.mxu1 %v1542_v34 }
  0x4b   : > { %634 = vmatprep.subr.bf16.mxu0 %v1541_v32  ;;  %1368 = vmatprep.subr.bf16.mxu1 %v1543_v36 }
  0x4e   : > { %635 = vmatpush1.bf16.msra.mxu0 %v1539_v33 }
  0x4f   : > { %1390 = vmatprep.subr.bf16.mxu0 %v1544_v37 }
  0xf1   : > { %v361_v43 = vpop.f32.mrf.mxu0 }
  0xf2   : > { %v362_v44 = vadd.f32 %v361_v43, %v316_v42 }
  0xf3   : > { %v1428_v45 = vpop.f32.mrf.mxu0 }
  0xf4   : > { %v367_v46 = vpack.c.bf16 %v362_v44, %v362_v44 }
  0xf5   : > { %v364_v47 = vpop.f32.mrf.mxu0 }
  0xf6   : > { %v369_v48 = vmul.bf16 1009007652, %v367_v46  ;;  %vm368_vm2 = vcmp.ge.bf16.partialorder %v367_v46, 0 }
  0xf7   : > { %v1429_v51 = vpop.f32.mrf.mxu0 }
  0xf8   : > { %v370_v54 = vsel %vm368_vm2, %v367_v46, %v369_v48  ;;  %v1575_v48 = vld [vmem:[%s1850_s4 + $0x38] sm:$0xff]  }
  0xf9   : > { %612 = vmatmul.mubr.bf16.vlgmr.msra.gmra.mxu1 %v370_v54  ;;  %653 = vmatmul.mubr.bf16.vlgmr.msra.gmra.mxu0 %v370_v54  ;;  %v1577_v54 = vld [vmem:[%s1850_s4 + $0x28] sm:$0xff]  }
  0xfa   : > { %1369 = vmatpush3.bf16.msra.mxu1 %v1545_v49  ;;  %1391 = vmatpush3.bf16.msra.mxu0 %v1546_v50 }
  0xfb   : > { %1370 = vmatprep.subr.bf16.mxu1 %v1547_v52  ;;  %1392 = vmatprep.subr.bf16.mxu0 %v1548_v53  ;;  %v1576_v53 = vld [vmem:[%s1850_s4 + $0x30] sm:$0xff]  }
  0xfe   : > { %1371 = vmatpush3.bf16.msra.mxu1 %v1549_v55  ;;  %1393 = vmatpush3.bf16.msra.mxu0 %v1550_v56  ;;  %v1578_v55 = vld [vmem:[%s1850_s4 + $0x20] sm:$0xff]   ;;  %v1579_v56 = vld [vmem:[%s1850_s4 + $0x18] sm:$0xff]  }
  0xff   : > { %1372 = vmatprep.subr.bf16.mxu1 %v1551_v57  ;;  %1394 = vmatprep.subr.bf16.mxu0 %v1552_v58  ;;  %v1580_v57 = vld [vmem:[%s1850_s4 + $0x10] sm:$0xff]   ;;  %v1581_v58 = vld [vmem:[%s1850_s4 + $0x8] sm:$0xff]  }
 0x102   : > { %1373 = vmatpush3.bf16.msra.mxu1 %v1553_v59  ;;  %1395 = vmatpush3.bf16.msra.mxu0 %v1554_v60  ;;  %v1582_v59 = vld [vmem:[%s1850_s4] sm:$0xff]   ;;  %v743_v60 = vsub.s32 2, %v1769_v39 }
 0x103   : > { %1374 = vmatprep.subr.bf16.mxu1 %v1555_v61  ;;  %1396 = vmatprep.subr.bf16.mxu0 %v1556_v62 }
 0x106   : > { %1375 = vmatpush3.bf16.msra.mxu1 %v1557_v63  ;;  %1397 = vmatpush3.bf16.msra.mxu0 %v1558_v1  ;;  %v744_v63 = vrot.slane %v1775_v41, %v743_v60 }
 0x107   : > { %1376 = vmatprep.subr.bf16.mxu1 %v1559_v2  ;;  %1398 = vmatprep.subr.bf16.mxu0 %v1560_v3 }
 0x10a   : > { %1377 = vmatpush3.bf16.msra.mxu1 %v1561_v4  ;;  %1399 = vmatpush3.bf16.msra.mxu0 %v1562_v5 }
 0x10b   : > { %1378 = vmatprep.subr.bf16.mxu1 %v1563_v6  ;;  %1400 = vmatprep.subr.bf16.mxu0 %v1564_v7 }
 0x10e   : > { %1379 = vmatpush3.bf16.msra.mxu1 %v1565_v8  ;;  %1401 = vmatpush3.bf16.msra.mxu0 %v1566_v9 }
 0x10f   : > { %1380 = vmatprep.subr.bf16.mxu1 %v1567_v10  ;;  %1402 = vmatprep.subr.bf16.mxu0 %v1568_v11 }
 0x112   : > { %1381 = vmatpush3.bf16.msra.mxu1 %v1569_v12  ;;  %1403 = vmatpush3.bf16.msra.mxu0 %v1570_v13 }
 0x113   : > { %1382 = vmatprep.subr.bf16.mxu1 %v1571_v14  ;;  %1404 = vmatprep.subr.bf16.mxu0 %v1572_v15  ;;  %v1583_v14 = vld [vmem:[%s1851_s5 + $0x8] sm:$0xff]   ;;  %v1584_v15 = vld [vmem:[%s1851_s5] sm:$0xff]  }
 0x116   : > { %1383 = vmatpush3.bf16.msra.mxu1 %v1573_v16  ;;  %1405 = vmatpush3.bf16.msra.mxu0 %v1574_v17  ;;  %v1039_v16 = vsub.s32 3, %v1769_v39 }
 0x117   : > { %1430 = vmatprep.subr.bf16.mxu1 %v1661_v0  ;;  %1450 = vmatprep.subr.bf16.mxu0 %v1661_v0 }
 0x118   : > { %v1040_v17 = vrot.slane %v1775_v41, %v1039_v16 }
 0x1b9   : > { %v613_v26 = vpop.f32.mrf.mxu1  ;;  %v654_v27 = vpop.f32.mrf.mxu0 }
 0x1ba   : > { %v614_v28 = vadd.f32 %v613_v26, %v406_v22  ;;  %v655_v29 = vadd.f32 %v654_v27, %v414_v23 }
 0x1bb   : > { %v615_v30 = vpop.f32.mrf.mxu1  ;;  %v656_v31 = vpop.f32.mrf.mxu0 }
 0x1bc   : > { %v661_v32 = vpack.c.bf16 %v614_v28, %v614_v28  ;;  %v663_v33 = vpack.c.bf16 %v655_v29, %v655_v29  ;;  %v616_v34 = vadd.f32 %v615_v30, %v410_v24  ;;  %v657_v35 = vadd.f32 %v656_v31, %v418_v25 }
 0x1bd   : > { %v617_v36 = vpop.f32.mrf.mxu1  ;;  %v658_v37 = vpop.f32.mrf.mxu0  ;;  %v1139_v25 = vsub.s32 4, %v1769_v39 }
 0x1be   : > { %v662_v38 = vpack.c.bf16 %v616_v34, %v616_v34  ;;  %v664_v40 = vpack.c.bf16 %v657_v35, %v657_v35  ;;  %vm665_vm3 = vcmp.ge.bf16.partialorder %v661_v32, 0  ;;  %v669_v44 = vmul.bf16 1009007652, %v661_v32 }
 0x1bf   : > { %v618_v42 = vpop.f32.mrf.mxu1  ;;  %v659_v43 = vpop.f32.mrf.mxu0  ;;  %vm667_vm4 = vcmp.ge.bf16.partialorder %v663_v33, 0  ;;  %v671_v45 = vmul.bf16 1009007652, %v663_v33  ;;  %v1140_v26 = vrot.slane %v1775_v41, %v1139_v25 }
 0x1c0   : > { %v670_v46 = vmul.bf16 1009007652, %v662_v38  ;;  %v672_v47 = vmul.bf16 1009007652, %v664_v40  ;;  %vm666_vm5 = vcmp.ge.bf16.partialorder %v662_v38, 0  ;;  %vm668_vm6 = vcmp.ge.bf16.partialorder %v664_v40, 0 }
 0x1c1   : > { %v673_v51 = vsel %vm665_vm3, %v661_v32, %v669_v44  ;;  %v675_v52 = vsel %vm667_vm4, %v663_v33, %v671_v45 }
 0x1c2   : > { %v674_v49 = vsel %vm666_vm5, %v662_v38, %v670_v46  ;;  %v676_v50 = vsel %vm668_vm6, %v664_v40, %v672_v47 }
 0x1c3   : > { %969 = vmatprep.mubr.bf16.mxu1 %v674_v49  ;;  %1009 = vmatprep.mubr.bf16.mxu0 %v676_v50 }
 0x1c4   : > { %970 = vmatmul.mubr.bf16.vlgmr.msra.gmra.mxu1 %v673_v51  ;;  %1010 = vmatmul.mubr.bf16.vlgmr.msra.gmra.mxu0 %v675_v52 }
 0x1c5   : > { %1431 = vmatpush3.bf16.msra.mxu1 %v1575_v48  ;;  %1446 = vmatprep.mubr.msk.bf16.mxu1 %vm1662_vm0, %v1661_v0 }
 0x1c6   : > { %1432 = vmatprep.subr.bf16.mxu1 %v1661_v0  ;;  %1454 = vmatprep.mubr.msk.bf16.mxu0 %vm1662_vm0, %v1661_v0 }
 0x1c7   : > { %1451 = vmatpush3.bf16.msra.mxu0 %v1583_v14 }
 0x1c8   : > { %1452 = vmatprep.subr.bf16.mxu0 %v1661_v0 }
 0x1c9   : > { %1433 = vmatpush3.bf16.msra.mxu1 %v1576_v53 }
 0x1ca   : > { %1434 = vmatprep.subr.bf16.mxu1 %v1661_v0 }
 0x1cb   : > { %1453 = vmatpush3.bf16.msra.mxu0 %v1584_v15 }
 0x1cd   : > { %1435 = vmatpush3.bf16.msra.mxu1 %v1577_v54 }
 0x1ce   : > { %1436 = vmatprep.subr.bf16.mxu1 %v1661_v0 }
 0x1d1   : > { %1437 = vmatpush3.bf16.msra.mxu1 %v1578_v55 }
 0x1d2   : > { %1438 = vmatprep.subr.bf16.mxu1 %v1661_v0 }
 0x1d5   : > { %1439 = vmatpush3.bf16.msra.mxu1 %v1579_v56 }
 0x1d6   : > { %1440 = vmatprep.subr.bf16.mxu1 %v1661_v0 }
 0x1d9   : > { %1441 = vmatpush3.bf16.msra.mxu1 %v1580_v57 }
 0x1da   : > { %1442 = vmatprep.subr.bf16.mxu1 %v1661_v0 }
 0x1dd   : > { %1443 = vmatpush3.bf16.msra.mxu1 %v1581_v58 }
 0x1de   : > { %1444 = vmatprep.subr.bf16.mxu1 %v1661_v0 }
 0x1e1   : > { %1445 = vmatpush3.bf16.msra.mxu1 %v1582_v59 }
 0x284   : > { %v1384_v61 = vpop.f32.mrf.mxu1  ;;  %v1406_v62 = vpop.f32.mrf.mxu0 }
 0x286   : > { %v1385_v1 = vpop.f32.mrf.mxu1  ;;  %v1407_v2 = vpop.f32.mrf.mxu0 }
 0x287   : > { %v1386_v3 = vadd.f32 %v1385_v1, %v1384_v61  ;;  %v1408_v7 = vadd.f32 %v1407_v2, %v1406_v62 }
 0x288   : > { %v1387_v4 = vpop.f32.mrf.mxu1  ;;  %v1409_v5 = vpop.f32.mrf.mxu0 }
 0x289   : > { %v972_v6 = vadd.f32 %v1386_v3, %v744_v63 }
 0x28a   : > { %v1388_v8 = vpop.f32.mrf.mxu1  ;;  %v1410_v9 = vpop.f32.mrf.mxu0 }
 0x28b   : > { %v1012_v10 = vadd.f32 %v1408_v7, %v972_v6 }
 0x28d   : > { %v1017_v11 = vpack.c.bf16 %v1012_v10, %v1012_v10 }
 0x28f   : > { %v1019_v12 = vmul.bf16 1009007652, %v1017_v11  ;;  %vm1018_vm7 = vcmp.ge.bf16.partialorder %v1017_v11, 0 }
 0x291   : > { %v1020_v13 = vsel %vm1018_vm7, %v1017_v11, %v1019_v12 }
 0x292   : > { %1447 = vmatmul.mubr.bf16.vlgmr.msra.gmra.mxu1 %v1020_v13 }
 0x352   : > { %v1123_v18 = vpop.f32.mrf.mxu1 }
 0x353   : > { %v1124_v19 = vadd.f32 %v1123_v18, %v1040_v17 }
 0x354   : > { %v1448_v20 = vpop.f32.mrf.mxu1 }
 0x355   : > { %v1129_v21 = vpack.c.bf16 %v1124_v19, %v1124_v19 }
 0x356   : > { %v1126_v22 = vpop.f32.mrf.mxu1 }
 0x357   : > { %vm1130_vm8 = vcmp.ge.bf16.partialorder %v1129_v21, 0  ;;  %v1131_v23 = vmul.bf16 1009007652, %v1129_v21 }
 0x358   : > { %v1449_v24 = vpop.f32.mrf.mxu1 }
 0x359   : > { %v1132_v0 = vsel %vm1130_vm8, %v1129_v21, %v1131_v23 }
 0x35a   : > { %1455 = vmatmul.mubr.msk.bf16.vlgmr.msra.gmra.mxu0 %vm1153_vm9, %v1132_v0 }
 0x41a   : > { %v1191_v27 = vpop.f32.mrf.mxu0 }
 0x41b   : > { %v1192_v28 = vadd.f32 %v1191_v27, %v1140_v26 }
 0x41c   : > { %v1456_v29 = vpop.f32.mrf.mxu0 }
 0x41d   : > { %1585 = vtanh.f32 %v1192_v28 }
 0x41e   : > { %v1194_v30 = vpop.f32.mrf.mxu0 }
 0x420   : > { %v1457_v31 = vpop.f32.mrf.mxu0 }
 0x42a   : > { %v1586_v32 = vpop.eup %1585 }
 0x42b   : > { %v1198_v33 = vmul.f32 2.0, %v1586_v32 }
 0x42d   : > { %1200 = vst.msk [vmem:[%s303_s14] sm:$0xff] %vm1199_vm10, %v1198_v33 }
 0x42e PF: > { %s19_s24 = sadd.s32 1, %s1653_s24  }
 0x42f   : > { %p16_p2 = scmp.ge.s32.totalorder %s19_s24, 4  }
 0x431   :  { %18 = sbr.rel (!%p16_p2) target bundleno = 2 (0x2), region = 87 }
 0x436   :  { %1220 = vsyncpa [#allocation3], 1 }
 0x437   :  { %1222 = vsyncpa [#allocation3 + $0x1], 1 }
 0x438   :  { %1223 = vsyncpa [#allocation5], 1 }

</bundles_post_ra>
